<compile_context>
chip_gen: v6e
topology: v6e:2x2x1
jax: 0.10.0
libtpu: 0.0.40
codegen_flags: <defaults>
</compile_context>

<pallas_src>
import math

import jax
import jax.numpy as jnp
from jax import lax
from jax.experimental import pallas as pl
from jax.experimental.pallas import tpu as pltpu

# ---- synthetic ModelArgs (small) ----
B = 2            # batch
S = 8            # seq len
DIM = 64         # model dim
N_HEADS = 4
HEAD_DIM = DIM // N_HEADS      # 16
HD2 = HEAD_DIM // 2            # 8 (rope pairs)
MULTIPLE_OF = 32
HIDDEN = MULTIPLE_OF * ((4 * DIM + MULTIPLE_OF - 1) // MULTIPLE_OF)  # 256
EPS = 1e-5
NEG_INF = -1e30  # finite stand-in for -inf (same softmax result, no NaNs)
R = B * S        # folded token rows


def transformer_block_kernel(x_ref, cos_ref, sin_ref, mask_ref,
                             an_w_ref, fn_w_ref,
                             wqkv_ref, wo_ref, w13_ref, w2_ref,
                             o_ref):
    x = x_ref[...]                        # (R, D) f32
    cos = cos_ref[...][None]              # (1, R, HD2) f32
    sin = sin_ref[...][None]
    mask = mask_ref[...][None]            # (1, R, R) block-diag causal

    # ---- attention RMSNorm (f32 VPU math) ----
    ms = jnp.mean(x * x, axis=-1, keepdims=True)
    xn = (x * lax.rsqrt(ms + EPS)) * an_w_ref[...]               # (R, D)
    xn_b = jnp.broadcast_to(xn.astype(jnp.bfloat16)[None], (N_HEADS, R, DIM))

    # ---- fused per-head QKV projection (bf16 in, f32 acc) ----
    qkv = jnp.einsum('hrd,hde->hre', xn_b, wqkv_ref[...],
                     preferred_element_type=jnp.float32)          # (H, R, 3*HD)
    q = qkv[:, :, 0:HEAD_DIM]             # [evens|odds] per head, 1/sqrt(hd) folded in
    k = qkv[:, :, HEAD_DIM:2 * HEAD_DIM]  # [evens|odds] per head
    v = qkv[:, :, 2 * HEAD_DIM:3 * HEAD_DIM]   # original dim order

    # ---- RoPE, split-half form, all heads at once ----
    q1, q2 = q[..., :HD2], q[..., HD2:]
    k1, k2 = k[..., :HD2], k[..., HD2:]
    q = jnp.concatenate([q1 * cos - q2 * sin, q1 * sin + q2 * cos], axis=-1)
    k = jnp.concatenate([k1 * cos - k2 * sin, k1 * sin + k2 * cos], axis=-1)

    # ---- head-batched attention (block-diag mask = per-batch causal) ----
    s = jnp.einsum('hqd,hkd->hqk', q.astype(jnp.bfloat16), k.astype(jnp.bfloat16),
                   preferred_element_type=jnp.float32) + mask     # (H, R, R)
    s = s - jnp.max(s, axis=-1, keepdims=True)
    p = jnp.exp(s)
    p = p * pl.reciprocal(jnp.sum(p, axis=-1, keepdims=True), approx=True)
    attn = jnp.einsum('hqk,hkd->hqd', p.astype(jnp.bfloat16), v.astype(jnp.bfloat16),
                      preferred_element_type=jnp.float32)         # (H, R, HD)

    # ---- output projection folded over heads (no in-kernel transpose) ----
    attn = jnp.einsum('hrd,hde->hre', attn.astype(jnp.bfloat16), wo_ref[...],
                      preferred_element_type=jnp.float32)         # (H, R, D)
    h1 = x + jnp.sum(attn, axis=0)                                # first residual

    # ---- FFN RMSNorm ----
    ms2 = jnp.mean(h1 * h1, axis=-1, keepdims=True)
    hn = ((h1 * lax.rsqrt(ms2 + EPS)) * fn_w_ref[...]).astype(jnp.bfloat16)

    # ---- SwiGLU FFN with fused W1|W3 ----
    gu = jnp.dot(hn, w13_ref[...], preferred_element_type=jnp.float32)  # (R, 2*HIDDEN)
    g, u = gu[:, :HIDDEN], gu[:, HIDDEN:]
    silu = g * pl.reciprocal(1.0 + jnp.exp(-g), approx=True)            # EUP-friendly
    ff = jnp.dot((silu * u).astype(jnp.bfloat16), w2_ref[...],
                 preferred_element_type=jnp.float32)                     # (R, D)

    o_ref[...] = h1 + ff


def _prep_weights(params):
    """Permute/scale/fuse the f32 weights into the kernel's bf16 layout."""
    perm = jnp.concatenate([jnp.arange(0, HEAD_DIM, 2), jnp.arange(1, HEAD_DIM, 2)])
    scale = 1.0 / math.sqrt(HEAD_DIM)

    def to_heads(w):                      # (D, D) -> (H, D, HD)
        return jnp.transpose(w.reshape(DIM, N_HEADS, HEAD_DIM), (1, 0, 2))

    wq = to_heads(params["wq"])[:, :, perm] * scale   # RoPE [evens|odds] + score scale
    wk = to_heads(params["wk"])[:, :, perm]
    wv = to_heads(params["wv"])
    wqkv = jnp.concatenate([wq, wk, wv], axis=-1).astype(jnp.bfloat16)   # (H, D, 3*HD)
    wo = params["wo"].reshape(N_HEADS, HEAD_DIM, DIM).astype(jnp.bfloat16)
    w13 = jnp.concatenate([params["w1"], params["w3"]], axis=-1).astype(jnp.bfloat16)
    w2 = params["w2"].astype(jnp.bfloat16)
    return wqkv, wo, w13, w2


def transformer_block(x, cos, sin, params):
    """x: (B, S, D) f32. Returns (B, S, D) f32."""
    wqkv, wo, w13, w2 = _prep_weights(params)
    x_flat = x.reshape(R, DIM)
    cos_r = jnp.tile(cos, (B, 1))          # (R, HD2): row r -> position r % S
    sin_r = jnp.tile(sin, (B, 1))

    # Block-diagonal causal mask over folded (batch*seq) rows.
    bid = jnp.arange(R) // S
    pos = jnp.arange(R) % S
    allowed = (bid[:, None] == bid[None, :]) & (pos[:, None] >= pos[None, :])
    mask_r = jnp.where(allowed, 0.0, NEG_INF).astype(jnp.float32)

    vmem = pl.BlockSpec(memory_space=pltpu.MemorySpace.VMEM)
    out = pl.pallas_call(
        transformer_block_kernel,
        out_shape=jax.ShapeDtypeStruct((R, DIM), jnp.float32),
        in_specs=[vmem] * 10,
        out_specs=vmem,
    )(x_flat, cos_r, sin_r, mask_r,
      params["an"].reshape(1, DIM), params["fn"].reshape(1, DIM),
      wqkv, wo, w13, w2)
    return out.reshape(B, S, DIM)


# ---------- pure-JAX f32 reference (mirrors the PyTorch forward exactly) ----------
def ref_block(x, cos, sin, mask, p):
    def rms(t, w):
        ms = jnp.mean(t * t, axis=-1, keepdims=True)
        return w * (t * lax.rsqrt(ms + EPS))

    xn = rms(x, p["an"])
    q = (xn @ p["wq"]).reshape(B, S, N_HEADS, HEAD_DIM)
    k = (xn @ p["wk"]).reshape(B, S, N_HEADS, HEAD_DIM)
    v = (xn @ p["wv"]).reshape(B, S, N_HEADS, HEAD_DIM)

    def rope(t):  # interleaved complex rotation, as in apply_rotary_emb
        t = t.reshape(B, S, N_HEADS, HD2, 2)
        c = cos[None, :, None, :]
        s = sin[None, :, None, :]
        re = t[..., 0] * c - t[..., 1] * s
        im = t[..., 0] * s + t[..., 1] * c
        return jnp.stack([re, im], axis=-1).reshape(B, S, N_HEADS, HEAD_DIM)

    q, k = rope(q), rope(k)
    q = q.transpose(0, 2, 1, 3)
    k = k.transpose(0, 2, 1, 3)
    v = v.transpose(0, 2, 1, 3)
    scores = (q @ jnp.swapaxes(k, -1, -2)) / math.sqrt(HEAD_DIM) + mask
    probs = jax.nn.softmax(scores, axis=-1)
    out = (probs @ v).transpose(0, 2, 1, 3).reshape(B, S, DIM)
    h = x + out @ p["wo"]

    hn = rms(h, p["fn"])
    ff = (jax.nn.silu(hn @ p["w1"]) * (hn @ p["w3"])) @ p["w2"]
    return h + ff


if __name__ == "__main__":
    key = jax.random.PRNGKey(0)
    keys = jax.random.split(key, 9)
    scale = 0.05
    params = {
        "an": jnp.ones((DIM,), jnp.float32),
        "fn": jnp.ones((DIM,), jnp.float32),
        "wq": scale * jax.random.normal(keys[0], (DIM, DIM), jnp.float32),
        "wk": scale * jax.random.normal(keys[1], (DIM, DIM), jnp.float32),
        "wv": scale * jax.random.normal(keys[2], (DIM, DIM), jnp.float32),
        "wo": scale * jax.random.normal(keys[3], (DIM, DIM), jnp.float32),
        "w1": scale * jax.random.normal(keys[4], (DIM, HIDDEN), jnp.float32),
        "w2": scale * jax.random.normal(keys[5], (HIDDEN, DIM), jnp.float32),
        "w3": scale * jax.random.normal(keys[6], (DIM, HIDDEN), jnp.float32),
    }

    x = jax.random.normal(keys[7], (B, S, DIM), jnp.float32)

    # RoPE tables: theta_i = 10000^(-2i/head_dim), angle = pos * theta_i
    inv_freq = 1.0 / (10000.0 ** (jnp.arange(0, HEAD_DIM, 2, dtype=jnp.float32) / HEAD_DIM))
    angles = jnp.arange(S, dtype=jnp.float32)[:, None] * inv_freq[None, :]   # (S, HD2)
    cos, sin = jnp.cos(angles), jnp.sin(angles)

    out = transformer_block(x, cos, sin, params)
    out = jax.block_until_ready(out)

    # f32 reference with the standard (S, S) causal mask.
    ref_mask = jnp.where(jnp.tril(jnp.ones((S, S), bool)), 0.0, NEG_INF).astype(jnp.float32)
    ref = ref_block(x, cos, sin, ref_mask, params)

    assert out.shape == (B, S, DIM)
    # Tolerance absorbs bf16 weight/activation casts + approx reciprocals.
    assert jnp.allclose(out, ref, rtol=2e-2, atol=2e-2), float(jnp.max(jnp.abs(out - ref)))

    print("KERNEL_OK")
</pallas_src>

<mosaic_0001>
module attributes {stable_mosaic.version = 11 : i64} {
  func.func @transformer_block_kernel(%arg0: memref<16x64xf32, #tpu.memory_space<vmem>>, %arg1: memref<16x8xf32, #tpu.memory_space<vmem>>, %arg2: memref<16x8xf32, #tpu.memory_space<vmem>>, %arg3: memref<16x16xf32, #tpu.memory_space<vmem>>, %arg4: memref<1x64xf32, #tpu.memory_space<vmem>>, %arg5: memref<1x64xf32, #tpu.memory_space<vmem>>, %arg6: memref<4x64x48xbf16, #tpu.memory_space<vmem>>, %arg7: memref<4x16x64xbf16, #tpu.memory_space<vmem>>, %arg8: memref<64x512xbf16, #tpu.memory_space<vmem>>, %arg9: memref<256x64xbf16, #tpu.memory_space<vmem>>, %arg10: memref<16x64xf32, #tpu.memory_space<vmem>>) attributes {dimension_semantics = [], scalar_prefetch = 0 : i64, scratch_operands = 0 : i64, tpu.core_type = #tpu.core_type<tc>} {
    %c0 = arith.constant 0 : index
    %c0_0 = arith.constant 0 : index
    %0 = vector.load %arg0[%c0, %c0_0] : memref<16x64xf32, #tpu.memory_space<vmem>>, vector<16x64xf32>
    %c0_1 = arith.constant 0 : index
    %c0_2 = arith.constant 0 : index
    %1 = vector.load %arg1[%c0_1, %c0_2] : memref<16x8xf32, #tpu.memory_space<vmem>>, vector<16x8xf32>
    %2 = vector.shape_cast %1 : vector<16x8xf32> to vector<1x16x8xf32>
    %c0_3 = arith.constant 0 : index
    %c0_4 = arith.constant 0 : index
    %3 = vector.load %arg2[%c0_3, %c0_4] : memref<16x8xf32, #tpu.memory_space<vmem>>, vector<16x8xf32>
    %4 = vector.shape_cast %3 : vector<16x8xf32> to vector<1x16x8xf32>
    %c0_5 = arith.constant 0 : index
    %c0_6 = arith.constant 0 : index
    %5 = vector.load %arg3[%c0_5, %c0_6] : memref<16x16xf32, #tpu.memory_space<vmem>>, vector<16x16xf32>
    %6 = vector.shape_cast %5 : vector<16x16xf32> to vector<1x16x16xf32>
    %7 = arith.mulf %0, %0 : vector<16x64xf32>
    %cst = arith.constant dense<0.000000e+00> : vector<16xf32>
    %8 = vector.multi_reduction <add>, %7, %cst [1] : vector<16x64xf32> to vector<16xf32>
    %9 = vector.shape_cast %8 : vector<16xf32> to vector<16x1xf32>
    %cst_7 = arith.constant 6.400000e+01 : f32
    %10 = vector.broadcast %cst_7 : f32 to vector<16x1xf32>
    %11 = arith.divf %9, %10 : vector<16x1xf32>
    %cst_8 = arith.constant 9.99999974E-6 : f32
    %12 = vector.broadcast %cst_8 : f32 to vector<16x1xf32>
    %13 = arith.addf %11, %12 : vector<16x1xf32>
    %14 = math.rsqrt %13 : vector<16x1xf32>
    %15 = vector.broadcast %14 : vector<16x1xf32> to vector<16x64xf32>
    %16 = arith.mulf %0, %15 : vector<16x64xf32>
    %c0_9 = arith.constant 0 : index
    %c0_10 = arith.constant 0 : index
    %17 = vector.load %arg4[%c0_9, %c0_10] : memref<1x64xf32, #tpu.memory_space<vmem>>, vector<1x64xf32>
    %18 = vector.broadcast %17 : vector<1x64xf32> to vector<16x64xf32>
    %19 = arith.mulf %16, %18 : vector<16x64xf32>
    %20 = arith.truncf %19 : vector<16x64xf32> to vector<16x64xbf16>
    %21 = vector.shape_cast %20 : vector<16x64xbf16> to vector<1x16x64xbf16>
    %22 = vector.shape_cast %21 : vector<1x16x64xbf16> to vector<1x16x64xbf16>
    %23 = vector.broadcast %22 : vector<1x16x64xbf16> to vector<4x16x64xbf16>
    %c0_11 = arith.constant 0 : index
    %c0_12 = arith.constant 0 : index
    %c0_13 = arith.constant 0 : index
    %24 = vector.load %arg6[%c0_11, %c0_12, %c0_13] : memref<4x64x48xbf16, #tpu.memory_space<vmem>>, vector<4x64x48xbf16>
    "tpu.trace_start"() <{level = 10 : i32, message = "hrd,hde->hre"}> : () -> ()
    %cst_14 = arith.constant dense<0.000000e+00> : vector<4x16x48xf32>
    %25 = tpu.matmul %23, %24, %cst_14 {dimension_numbers = #tpu.dot_dimension_numbers<[2], [1], [1], [2], [0, 0, 0, 1, 1, 2], [0], [0]>} : vector<4x16x64xbf16>, vector<4x64x48xbf16>, vector<4x16x48xf32> -> vector<4x16x48xf32>
    "tpu.trace_stop"() : () -> ()
    %26 = vector.extract_strided_slice %25 {offsets = [0, 0, 0], sizes = [4, 16, 16], strides = [1, 1, 1]} : vector<4x16x48xf32> to vector<4x16x16xf32>
    %27 = vector.extract_strided_slice %25 {offsets = [0, 0, 16], sizes = [4, 16, 16], strides = [1, 1, 1]} : vector<4x16x48xf32> to vector<4x16x16xf32>
    %28 = vector.extract_strided_slice %25 {offsets = [0, 0, 32], sizes = [4, 16, 16], strides = [1, 1, 1]} : vector<4x16x48xf32> to vector<4x16x16xf32>
    %29 = vector.extract_strided_slice %26 {offsets = [0, 0, 0], sizes = [4, 16, 8], strides = [1, 1, 1]} : vector<4x16x16xf32> to vector<4x16x8xf32>
    %30 = vector.extract_strided_slice %26 {offsets = [0, 0, 8], sizes = [4, 16, 8], strides = [1, 1, 1]} : vector<4x16x16xf32> to vector<4x16x8xf32>
    %31 = vector.extract_strided_slice %27 {offsets = [0, 0, 0], sizes = [4, 16, 8], strides = [1, 1, 1]} : vector<4x16x16xf32> to vector<4x16x8xf32>
    %32 = vector.extract_strided_slice %27 {offsets = [0, 0, 8], sizes = [4, 16, 8], strides = [1, 1, 1]} : vector<4x16x16xf32> to vector<4x16x8xf32>
    %33 = vector.broadcast %2 : vector<1x16x8xf32> to vector<4x16x8xf32>
    %34 = arith.mulf %29, %33 : vector<4x16x8xf32>
    %35 = vector.broadcast %4 : vector<1x16x8xf32> to vector<4x16x8xf32>
    %36 = arith.mulf %30, %35 : vector<4x16x8xf32>
    %37 = arith.subf %34, %36 : vector<4x16x8xf32>
    %38 = vector.broadcast %4 : vector<1x16x8xf32> to vector<4x16x8xf32>
    %39 = arith.mulf %29, %38 : vector<4x16x8xf32>
    %40 = vector.broadcast %2 : vector<1x16x8xf32> to vector<4x16x8xf32>
    %41 = arith.mulf %30, %40 : vector<4x16x8xf32>
    %42 = arith.addf %39, %41 : vector<4x16x8xf32>
    %43 = tpu.concatenate %37, %42 in 2 : vector<4x16x8xf32>, vector<4x16x8xf32> -> vector<4x16x16xf32>
    %44 = vector.broadcast %2 : vector<1x16x8xf32> to vector<4x16x8xf32>
    %45 = arith.mulf %31, %44 : vector<4x16x8xf32>
    %46 = vector.broadcast %4 : vector<1x16x8xf32> to vector<4x16x8xf32>
    %47 = arith.mulf %32, %46 : vector<4x16x8xf32>
    %48 = arith.subf %45, %47 : vector<4x16x8xf32>
    %49 = vector.broadcast %4 : vector<1x16x8xf32> to vector<4x16x8xf32>
    %50 = arith.mulf %31, %49 : vector<4x16x8xf32>
    %51 = vector.broadcast %2 : vector<1x16x8xf32> to vector<4x16x8xf32>
    %52 = arith.mulf %32, %51 : vector<4x16x8xf32>
    %53 = arith.addf %50, %52 : vector<4x16x8xf32>
    %54 = tpu.concatenate %48, %53 in 2 : vector<4x16x8xf32>, vector<4x16x8xf32> -> vector<4x16x16xf32>
    %55 = arith.truncf %43 : vector<4x16x16xf32> to vector<4x16x16xbf16>
    %56 = arith.truncf %54 : vector<4x16x16xf32> to vector<4x16x16xbf16>
    "tpu.trace_start"() <{level = 10 : i32, message = "hqd,hkd->hqk"}> : () -> ()
    %cst_15 = arith.constant dense<0.000000e+00> : vector<4x16x16xf32>
    %57 = tpu.matmul %55, %56, %cst_15 {dimension_numbers = #tpu.dot_dimension_numbers<[2], [2], [1], [1], [0, 0, 0, 1, 1, 1], [0], [0]>} : vector<4x16x16xbf16>, vector<4x16x16xbf16>, vector<4x16x16xf32> -> vector<4x16x16xf32>
    "tpu.trace_stop"() : () -> ()
    %58 = vector.broadcast %6 : vector<1x16x16xf32> to vector<4x16x16xf32>
    %59 = arith.addf %57, %58 : vector<4x16x16xf32>
    %cst_16 = arith.constant dense<0xFF800000> : vector<4x16xf32>
    %60 = vector.multi_reduction <maximumf>, %59, %cst_16 [2] : vector<4x16x16xf32> to vector<4x16xf32>
    %61 = vector.shape_cast %60 : vector<4x16xf32> to vector<4x16x1xf32>
    %62 = vector.broadcast %61 : vector<4x16x1xf32> to vector<4x16x16xf32>
    %63 = arith.subf %59, %62 : vector<4x16x16xf32>
    %64 = math.exp %63 : vector<4x16x16xf32>
    %cst_17 = arith.constant dense<0.000000e+00> : vector<4x16xf32>
    %65 = vector.multi_reduction <add>, %64, %cst_17 [2] : vector<4x16x16xf32> to vector<4x16xf32>
    %66 = vector.shape_cast %65 : vector<4x16xf32> to vector<4x16x1xf32>
    %67 = tpu.reciprocal %66 {approx = true} : vector<4x16x1xf32> -> vector<4x16x1xf32>
    %68 = vector.broadcast %67 : vector<4x16x1xf32> to vector<4x16x16xf32>
    %69 = arith.mulf %64, %68 : vector<4x16x16xf32>
    %70 = arith.truncf %69 : vector<4x16x16xf32> to vector<4x16x16xbf16>
    %71 = arith.truncf %28 : vector<4x16x16xf32> to vector<4x16x16xbf16>
    "tpu.trace_start"() <{level = 10 : i32, message = "hqk,hkd->hqd"}> : () -> ()
    %cst_18 = arith.constant dense<0.000000e+00> : vector<4x16x16xf32>
    %72 = tpu.matmul %70, %71, %cst_18 {dimension_numbers = #tpu.dot_dimension_numbers<[2], [1], [1], [2], [0, 0, 0, 1, 1, 2], [0], [0]>} : vector<4x16x16xbf16>, vector<4x16x16xbf16>, vector<4x16x16xf32> -> vector<4x16x16xf32>
    "tpu.trace_stop"() : () -> ()
    %73 = arith.truncf %72 : vector<4x16x16xf32> to vector<4x16x16xbf16>
    %c0_19 = arith.constant 0 : index
    %c0_20 = arith.constant 0 : index
    %c0_21 = arith.constant 0 : index
    %74 = vector.load %arg7[%c0_19, %c0_20, %c0_21] : memref<4x16x64xbf16, #tpu.memory_space<vmem>>, vector<4x16x64xbf16>
    "tpu.trace_start"() <{level = 10 : i32, message = "hrd,hde->hre"}> : () -> ()
    %cst_22 = arith.constant dense<0.000000e+00> : vector<4x16x64xf32>
    %75 = tpu.matmul %73, %74, %cst_22 {dimension_numbers = #tpu.dot_dimension_numbers<[2], [1], [1], [2], [0, 0, 0, 1, 1, 2], [0], [0]>} : vector<4x16x16xbf16>, vector<4x16x64xbf16>, vector<4x16x64xf32> -> vector<4x16x64xf32>
    "tpu.trace_stop"() : () -> ()
    %cst_23 = arith.constant dense<0.000000e+00> : vector<16x64xf32>
    %76 = vector.multi_reduction <add>, %75, %cst_23 [0] : vector<4x16x64xf32> to vector<16x64xf32>
    %77 = arith.addf %0, %76 : vector<16x64xf32>
    %78 = arith.mulf %77, %77 : vector<16x64xf32>
    %cst_24 = arith.constant dense<0.000000e+00> : vector<16xf32>
    %79 = vector.multi_reduction <add>, %78, %cst_24 [1] : vector<16x64xf32> to vector<16xf32>
    %80 = vector.shape_cast %79 : vector<16xf32> to vector<16x1xf32>
    %cst_25 = arith.constant 6.400000e+01 : f32
    %81 = vector.broadcast %cst_25 : f32 to vector<16x1xf32>
    %82 = arith.divf %80, %81 : vector<16x1xf32>
    %cst_26 = arith.constant 9.99999974E-6 : f32
    %83 = vector.broadcast %cst_26 : f32 to vector<16x1xf32>
    %84 = arith.addf %82, %83 : vector<16x1xf32>
    %85 = math.rsqrt %84 : vector<16x1xf32>
    %86 = vector.broadcast %85 : vector<16x1xf32> to vector<16x64xf32>
    %87 = arith.mulf %77, %86 : vector<16x64xf32>
    %c0_27 = arith.constant 0 : index
    %c0_28 = arith.constant 0 : index
    %88 = vector.load %arg5[%c0_27, %c0_28] : memref<1x64xf32, #tpu.memory_space<vmem>>, vector<1x64xf32>
    %89 = vector.broadcast %88 : vector<1x64xf32> to vector<16x64xf32>
    %90 = arith.mulf %87, %89 : vector<16x64xf32>
    %91 = arith.truncf %90 : vector<16x64xf32> to vector<16x64xbf16>
    %c0_29 = arith.constant 0 : index
    %c0_30 = arith.constant 0 : index
    %92 = vector.load %arg8[%c0_29, %c0_30] : memref<64x512xbf16, #tpu.memory_space<vmem>>, vector<64x512xbf16>
    %cst_31 = arith.constant dense<0.000000e+00> : vector<16x512xf32>
    %93 = tpu.matmul %91, %92, %cst_31 {dimension_numbers = #tpu.dot_dimension_numbers<[1], [0], [0], [1], [0, 0, 1, 1], [], []>} : vector<16x64xbf16>, vector<64x512xbf16>, vector<16x512xf32> -> vector<16x512xf32>
    %94 = vector.extract_strided_slice %93 {offsets = [0, 0], sizes = [16, 256], strides = [1, 1]} : vector<16x512xf32> to vector<16x256xf32>
    %95 = vector.extract_strided_slice %93 {offsets = [0, 256], sizes = [16, 256], strides = [1, 1]} : vector<16x512xf32> to vector<16x256xf32>
    %cst_32 = arith.constant 0.000000e+00 : f32
    %96 = vector.broadcast %cst_32 : f32 to vector<16x256xf32>
    %97 = arith.subf %96, %94 : vector<16x256xf32>
    %98 = math.exp %97 : vector<16x256xf32>
    %cst_33 = arith.constant 1.000000e+00 : f32
    %99 = vector.broadcast %cst_33 : f32 to vector<16x256xf32>
    %100 = arith.addf %99, %98 : vector<16x256xf32>
    %101 = tpu.reciprocal %100 {approx = true} : vector<16x256xf32> -> vector<16x256xf32>
    %102 = arith.mulf %94, %101 : vector<16x256xf32>
    %103 = arith.mulf %102, %95 : vector<16x256xf32>
    %104 = arith.truncf %103 : vector<16x256xf32> to vector<16x256xbf16>
    %c0_34 = arith.constant 0 : index
    %c0_35 = arith.constant 0 : index
    %105 = vector.load %arg9[%c0_34, %c0_35] : memref<256x64xbf16, #tpu.memory_space<vmem>>, vector<256x64xbf16>
    %cst_36 = arith.constant dense<0.000000e+00> : vector<16x64xf32>
    %106 = tpu.matmul %104, %105, %cst_36 {dimension_numbers = #tpu.dot_dimension_numbers<[1], [0], [0], [1], [0, 0, 1, 1], [], []>} : vector<16x256xbf16>, vector<256x64xbf16>, vector<16x64xf32> -> vector<16x64xf32>
    %107 = arith.addf %77, %106 : vector<16x64xf32>
    %c0_37 = arith.constant 0 : index
    %c0_38 = arith.constant 0 : index
    %108 = vector.load %arg10[%c0_37, %c0_38] : memref<16x64xf32, #tpu.memory_space<vmem>>, vector<16x64xf32>
    tpu.vector_store %arg10[%c0_37, %c0_38], %107 {strides = array<i32>} : memref<16x64xf32, #tpu.memory_space<vmem>>, vector<16x64xf32>,
    return
  }
}

</mosaic_0001>

<bundles_post_ra>
// kernel: tpu_custom_call.1
= control target key start
LH: loop header
LB: loop body
LE: loop exit
PB: predicated region body
PF: predicated region fallthrough
CT: control target
= control target key end

     0   :  { %vm47_vm0 = vcmask 523264   ;;  %v2357_v8 = vmov 0.0   ;;  %vm2358_vm1 = vmmov 0   ;;  %s2999_s0 = inlined_call_operand.vmem [shape: f32[16,64], index: 0, kind: input, shape index: {}]   ;;  %s3000_s1 = inlined_call_operand.vmem [shape: f32[16,8], index: 1, kind: input, shape index: {}]   ;;  %s3001_s2 = inlined_call_operand.vmem [shape: f32[16,8], index: 2, kind: input, shape index: {}]   ;;  %s3002_s3 = inlined_call_operand.vmem [shape: f32[16,16], index: 3, kind: input, shape index: {}]   ;;  %s3003_s4 = inlined_call_operand.vmem [shape: f32[1,64], index: 4, kind: input, shape index: {}]   ;;  %s3004_s5 = inlined_call_operand.vmem [shape: f32[1,64], index: 5, kind: input, shape index: {}]   ;;  %s3005_s6 = inlined_call_operand.vmem [shape: bf16[4,64,48], index: 6, kind: input, shape index: {}]   ;;  %s3006_s7 = inlined_call_operand.vmem [shape: bf16[4,16,64], index: 7, kind: input, shape index: {}]   ;;  %s3007_s8 = inlined_call_operand.vmem [shape: bf16[64,512], index: 8, kind: input, shape index: {}]   ;;  %s3008_s9 = inlined_call_operand.vmem [shape: bf16[256,64], index: 9, kind: input, shape index: {}]   ;;  %s3009_s10 = inlined_call_operand.hbm [shape: f32[16,64], index: 10, kind: output, shape index: {}]  }
   0x1   :  { %v2426_v0 = vld [vmem:[%s2999_s0] sm:$0xff]  ;;  %v2431_v1 = vld [vmem:[%s2999_s0 + $0x8] sm:$0xff]  ;;  %v2217_v6 = vld [vmem:[%s3005_s6 + $0x18] sm:$0xff]   ;;  %2026 = vmatprep.subr.bf16.mxu1 %v2357_v8  ;;  %2050 = vmatprep.subr.bf16.mxu0 %v2357_v8 }
   0x2   :  { %v45_v2 = vmul.f32 %v2426_v0, %v2426_v0  ;;  %v46_v3 = vmul.f32 %v2431_v1, %v2431_v1  ;;  %v2218_v7 = vld [vmem:[%s3005_s6 + $0x58] sm:$0xff]   ;;  %2027 = vmatpush3.bf16.msra.mxu1 %v2217_v6  ;;  %v2219_v9 = vld [vmem:[%s3005_s6 + $0x10] sm:$0xff]   ;;  %v2221_v11 = vld [vmem:[%s3005_s6 + $0x8] sm:$0xff]   ;;  %2034 = vmatprep.mubr.msk.bf16.mxu1 %vm2358_vm1, %v2357_v8 }
   0x3   :  { %2051 = vmatpush3.bf16.msra.mxu0 %v2218_v7  ;;  %v2220_v10 = vld [vmem:[%s3005_s6 + $0x50] sm:$0xff]   ;;  %2028 = vmatprep.subr.bf16.mxu1 %v2357_v8  ;;  %v2222_v12 = vld [vmem:[%s3005_s6 + $0x48] sm:$0xff]   ;;  %v2223_v13 = vld [vmem:[%s3005_s6] sm:$0xff]  }
   0x4   :  { %v48_v4 = vsel %vm47_vm0, %v45_v2, 0.0  ;;  %v51_v5 = vsel %vm47_vm0, %v46_v3, 0.0  ;;  %2052 = vmatprep.subr.bf16.mxu0 %v2357_v8  ;;  %2058 = vmatprep.mubr.msk.bf16.mxu0 %vm2358_vm1, %v2357_v8  ;;  %v2224_v14 = vld [vmem:[%s3005_s6 + $0x40] sm:$0xff]  }
   0x5   :  { %49 = vadd.xlane.f32.xlu0 %v48_v4 }
   0x6   :  { %2029 = vmatpush3.bf16.msra.mxu1 %v2219_v9 }
   0x7   :  { %2053 = vmatpush3.bf16.msra.mxu0 %v2220_v10  ;;  %2030 = vmatprep.subr.bf16.mxu1 %v2357_v8 }
   0x8   :  { %2054 = vmatprep.subr.bf16.mxu0 %v2357_v8 }
   0x9   :  { %52 = vadd.xlane.f32.xlu0 %v51_v5 }
   0xa   :  { %2031 = vmatpush3.bf16.msra.mxu1 %v2221_v11 }
   0xb   :  { %2055 = vmatpush3.bf16.msra.mxu0 %v2222_v12  ;;  %2032 = vmatprep.subr.bf16.mxu1 %v2357_v8 }
   0xc   :  { %2056 = vmatprep.subr.bf16.mxu0 %v2357_v8 }
   0xd   :  { %15 = vsyncpa [#allocation3], 0  ;;  %v2480_v15 = vld [vmem:[%s3001_s2] sm:$0xff]  ;;  %s2359_s15 = smov 24   ;;  %v2491_v17 = vld [vmem:[%s3001_s2 + $0x8] sm:$0xff]  ;;  %s2360_s22 = smov 16  }
   0xe   :  { %2033 = vmatpush3.bf16.msra.mxu1 %v2223_v13  ;;  %551 = vrot.lane.b32.xlu1 %v2480_v15, %s2359_s15  ;;  %v2486_v16 = vld [vmem:[%s3000_s1] sm:$0xff]  ;;  %v2498_v18 = vld [vmem:[%s3000_s1 + $0x8] sm:$0xff]  ;;  %s2361_s23 = smov 8   ;;  %v2225_v32 = vld [vmem:[%s3005_s6 + $0x38] sm:$0xff]   ;;  %s2363_s19 = smov 112   ;;  %vm528_vm2 = vcmask 64512  }
   0xf   :  { %2057 = vmatpush3.bf16.msra.mxu0 %v2224_v14  ;;  %2038 = vmatprep.subr.bf16.mxu1 %v2357_v8  ;;  %v1888_v28 = vld [vmem:[%s3003_s4] ss:$0 sm:$0xff]  ;;  %v2226_v34 = vld [vmem:[%s3005_s6 + $0x30] sm:$0xff]   ;;  %v2227_v35 = vld [vmem:[%s3005_s6 + $0x28] sm:$0xff]   ;;  %vm753_vm3 = vcmask 130048  }
  0x10   :  { %2074 = vmatprep.subr.bf16.mxu0 %v2357_v8  ;;  %v2228_v36 = vld [vmem:[%s3005_s6 + $0x20] sm:$0xff]   ;;  %v2229_v37 = vld [vmem:[%s3005_s6 + $0x78] sm:$0xff]   ;;  %v2230_v38 = vld [vmem:[%s3005_s6 + $0x70] sm:$0xff]  }
  0x11   :  { %v2231_v39 = vld [vmem:[%s3005_s6 + $0x68] sm:$0xff]   ;;  %v2232_v40 = vld [vmem:[%s3005_s6 + $0x60] sm:$0xff]   ;;  %s2362_s6 = smov 120  }
  0x12   :  { %553 = vrot.lane.b32.xlu1 %v2491_v17, %s2359_s15 }
  0x16   :  { %621 = vrot.lane.b32.xlu1 %v2498_v18, %s2359_s15 }
  0x1a   :  { %442 = vrot.lane.b32.xlu1 %v2486_v16, %s2361_s23 }
  0x1e   :  { %444 = vrot.lane.b32.xlu1 %v2498_v18, %s2361_s23 }
  0x1f   :  { %619 = vrot.lane.b32.xlu0 %v2486_v16, %s2359_s15 }
  0x22   :  { %537 = vrot.lane.b32.xlu1 %v2486_v16, %s2360_s22 }
  0x23   :  { %607 = vrot.lane.b32.xlu0 %v2491_v17, %s2360_s22 }
  0x26   :  { %539 = vrot.lane.b32.xlu1 %v2498_v18, %s2360_s22 }
  0x27   :  { %380 = vrot.lane.b32.xlu0 %v2491_v17, %s2361_s23 }
  0x2a   :  { %605 = vrot.lane.b32.xlu1 %v2480_v15, %s2360_s22 }
  0x2e   :  { %378 = vrot.lane.b32.xlu1 %v2480_v15, %s2361_s23 }
  0x80   :  { %v552_v41 = vpop.permute.xlu1 %551 }
  0x84   :  { %v554_v42 = vpop.permute.xlu1 %553 }
  0x88   :  { %v2562_v43 = vpop.permute.xlu1 %621 }
  0x8c   :  { %v443_v52 = vpop.permute.xlu1 %442 }
  0x8e   :  { %v50_v19 = vpop.xlane.xlu0 %49 }
  0x8f   :  { %v55_v20 = vmul.f32 0.015625, %v50_v19 }
  0x90   :  { %v445_v61 = vpop.permute.xlu1 %444 }
  0x91   :  { %v57_v21 = vadd.f32 1e-05, %v55_v20 }
  0x92   :  { %v53_v22 = vpop.xlane.xlu0 %52 }
  0x93   :  { %2277 = vrsqrt.f32 %v57_v21  ;;  %v56_v23 = vmul.f32 0.015625, %v53_v22 }
  0x94   :  { %v2610_v12 = vpop.permute.xlu1 %537 }
  0x95   :  { %v58_v24 = vadd.f32 1e-05, %v56_v23 }
  0x96   :  { %v620_v49 = vpop.permute.xlu0 %619 }
  0x97   :  { %2279 = vrsqrt.f32 %v58_v24 }
  0x98   :  { %v2621_v22 = vpop.permute.xlu1 %539 }
  0xa0   :  { %v2278_v25 = vpop.eup %2277 }
  0xa1   :  { %v61_v26 = vmul.f32 %v2278_v25, %v2426_v0 }
  0xa3   :  { %v70_v30 = vmul.f32 %v1888_v28, %v61_v26 }
  0xa4   :  { %v2280_v27 = vpop.eup %2279 }
  0xa5   :  { %v62_v29 = vmul.f32 %v2280_v27, %v2431_v1 }
  0xa7   :  { %v71_v31 = vmul.f32 %v1888_v28, %v62_v29  ;;  %v2633_v29 = vpop.permute.xlu1 %605 }
  0xa9   :  { %v72_v33 = vpack.c.bf16 %v71_v31, %v70_v30 }
  0xab   :  { %2035 = vmatmul.mubr.msk.bf16.vlgmr.msra.gmra.mxu1 %vm47_vm0, %v72_v33  ;;  %2059 = vmatmul.mubr.msk.bf16.vlgmr.msra.gmra.mxu0 %vm47_vm0, %v72_v33 }
  0xac   :  { %2039 = vmatpush3.bf16.msra.mxu1 %v2225_v32  ;;  %2046 = vmatprep.mubr.msk.bf16.mxu1 %vm2358_vm1, %v2357_v8  ;;  %v2640_v32 = vpop.permute.xlu0 %607 }
  0xad   :  { %2040 = vmatprep.subr.bf16.mxu1 %v2357_v8  ;;  %2076 = vmatprep.mubr.msk.bf16.mxu0 %vm2358_vm1, %v2357_v8 }
  0xb0   :  { %2041 = vmatpush3.bf16.msra.mxu1 %v2226_v34 }
  0xb1   :  { %2042 = vmatprep.subr.bf16.mxu1 %v2357_v8 }
  0xb4   :  { %2043 = vmatpush3.bf16.msra.mxu1 %v2227_v35  ;;  %v2644_v35 = vpop.permute.xlu1 %378 }
  0xb5   :  { %2044 = vmatprep.subr.bf16.mxu1 %v2357_v8 }
  0xb8   :  { %2045 = vmatpush3.bf16.msra.mxu1 %v2228_v36 }
  0xb9   :  { %2062 = vmatprep.subr.bf16.mxu1 %v2357_v8 }
  0xbb   :  { %2047 = vmatmul.mubr.msk.bf16.vlgmr.msra.gmra.mxu1 %vm47_vm0, %v72_v33 }
  0xbc   :  { %2063 = vmatpush3.bf16.msra.mxu1 %v2229_v37  ;;  %2070 = vmatprep.mubr.msk.bf16.mxu1 %vm2358_vm1, %v2357_v8 }
  0xbd   :  { %2064 = vmatprep.subr.bf16.mxu1 %v2357_v8 }
  0xc0   :  { %2065 = vmatpush3.bf16.msra.mxu1 %v2230_v38  ;;  %v2651_v38 = vpop.permute.xlu0 %380 }
  0xc1   :  { %2066 = vmatprep.subr.bf16.mxu1 %v2357_v8 }
  0xc4   :  { %2067 = vmatpush3.bf16.msra.mxu1 %v2231_v39 }
  0xc5   :  { %2068 = vmatprep.subr.bf16.mxu1 %v2357_v8 }
  0xc8   :  { %2069 = vmatpush3.bf16.msra.mxu1 %v2232_v40 }
  0xc9   :  { %2080 = vmatprep.subr.bf16.mxu1 %v2357_v8 }
  0xcb   :  { %2071 = vmatmul.mubr.msk.bf16.vlgmr.msra.gmra.mxu1 %vm47_vm0, %v72_v33 }
  0xcc   :  { %2082 = vmatprep.mubr.msk.bf16.mxu1 %vm2358_vm1, %v2357_v8 }
 0x16b   :  { %v2564_v44 = vpop.f32.mrf.mxu1  ;;  %v2566_v45 = vpop.f32.mrf.mxu0 }
 0x16c   :  { %v557_v46 = vmul.f32 %v552_v41, %v2564_v44  ;;  %v625_v54 = vmul.f32 %v620_v49, %v2564_v44  ;;  %v448_v58 = vmul.f32 %v443_v52, %v2564_v44  ;;  %v561_v63 = vmul.f32 %v552_v41, %v2566_v45 }
 0x16d   :  { %v2036_v47 = vpop.f32.mrf.mxu1  ;;  %v2060_v48 = vpop.f32.mrf.mxu0  ;;  %v629_v2 = vmul.f32 %v620_v49, %v2566_v45  ;;  %v452_v31 = vmul.f32 %v443_v52, %v2566_v45  ;;  %v384_v37 = vmul.f32 %v2644_v35, %v2564_v44 }
 0x16e   :  { %573 = vrot.lane.b32.xlu1 %v557_v46, %s2362_s6 }
 0x16f   :  { %v2570_v50 = vpop.f32.mrf.mxu1  ;;  %v2572_v51 = vpop.f32.mrf.mxu0 }
 0x170   :  { %v558_v53 = vmul.f32 %v554_v42, %v2570_v50  ;;  %v626_v57 = vmul.f32 %v2562_v43, %v2570_v50  ;;  %v1034_v59 = vpack.c.bf16 %v2570_v50, %v2564_v44  ;;  %v1036_v60 = vpack.c.bf16 %v2572_v51, %v2566_v45 }
 0x171   :  { %v2037_v55 = vpop.f32.mrf.mxu1  ;;  %v2061_v56 = vpop.f32.mrf.mxu0  ;;  %v449_v62 = vmul.f32 %v445_v61, %v2570_v50  ;;  %v562_v1 = vmul.f32 %v554_v42, %v2572_v51  ;;  %v630_v5 = vmul.f32 %v2562_v43, %v2572_v51  ;;  %v453_v33 = vmul.f32 %v445_v61, %v2572_v51 }
 0x172   :  { %575 = vrot.lane.b32.xlu0 %v558_v53, %s2362_s6  ;;  %641 = vrot.lane.b32.xlu1 %v625_v54, %s2362_s6  ;;  %v385_v40 = vmul.f32 %v2651_v38, %v2570_v50  ;;  %v544_v46 = vmul.f32 %v2621_v22, %v2570_v50  ;;  %v611_v53 = vmul.f32 %v2633_v29, %v2564_v44 }
 0x173   :  { %v612_v55 = vmul.f32 %v2640_v32, %v2570_v50 }
 0x176   :  { %643 = vrot.lane.b32.xlu0 %v626_v57, %s2362_s6  ;;  %464 = vrot.lane.b32.xlu1 %v448_v58, %s2362_s6 }
 0x17a   :  { %466 = vrot.lane.b32.xlu0 %v449_v62, %s2362_s6  ;;  %581 = vrot.lane.b32.xlu1 %v561_v63, %s2362_s6  ;;  %v432_v62 = vmul.f32 %v2564_v44, %v2480_v15 }
 0x17b   :  { %v2591_v0 = vpop.f32.mrf.mxu1 }
 0x17c   :  { %v559_v6 = vmul.f32 %v552_v41, %v2591_v0  ;;  %v627_v11 = vmul.f32 %v620_v49, %v2591_v0  ;;  %v450_v14 = vmul.f32 %v443_v52, %v2591_v0  ;;  %v386_v39 = vmul.f32 %v2644_v35, %v2591_v0 }
 0x17d   :  { %v2048_v3 = vpop.f32.mrf.mxu1 }
 0x17e   :  { %583 = vrot.lane.b32.xlu0 %v562_v1, %s2362_s6  ;;  %649 = vrot.lane.b32.xlu1 %v629_v2, %s2362_s6  ;;  %v433_v1 = vmul.f32 %v2570_v50, %v2491_v17 }
 0x17f   :  { %v2597_v4 = vpop.f32.mrf.mxu1 }
 0x180   :  { %v1035_v9 = vpack.c.bf16 %v2597_v4, %v2591_v0  ;;  %v560_v10 = vmul.f32 %v554_v42, %v2597_v4  ;;  %v628_v13 = vmul.f32 %v2562_v43, %v2597_v4  ;;  %v451_v20 = vmul.f32 %v445_v61, %v2597_v4 }
 0x181   :  { %v2049_v7 = vpop.f32.mrf.mxu1 }
 0x182   :  { %651 = vrot.lane.b32.xlu0 %v630_v5, %s2362_s6  ;;  %577 = vrot.lane.b32.xlu1 %v559_v6, %s2362_s6  ;;  %v547_v7 = vmul.f32 %v2610_v12, %v2566_v45 }
 0x186   :  { %579 = vrot.lane.b32.xlu0 %v560_v10, %s2362_s6  ;;  %645 = vrot.lane.b32.xlu1 %v627_v11, %s2362_s6  ;;  %v548_v11 = vmul.f32 %v2621_v22, %v2572_v51 }
 0x18a   :  { %647 = vrot.lane.b32.xlu0 %v628_v13, %s2362_s6  ;;  %468 = vrot.lane.b32.xlu1 %v450_v14, %s2362_s6 }
 0x18b   :  { %v2617_v19 = vpop.f32.mrf.mxu1 }
 0x18c   :  { %v563_v21 = vmul.f32 %v552_v41, %v2617_v19  ;;  %v631_v26 = vmul.f32 %v620_v49, %v2617_v19  ;;  %v454_v34 = vmul.f32 %v443_v52, %v2617_v19  ;;  %v387_v41 = vmul.f32 %v2651_v38, %v2597_v4 }
 0x18d   :  { %v2072_v23 = vpop.f32.mrf.mxu1 }
 0x18e   :  { %470 = vrot.lane.b32.xlu0 %v451_v20, %s2362_s6  ;;  %585 = vrot.lane.b32.xlu1 %v563_v21, %s2362_s6  ;;  %v615_v23 = vmul.f32 %v2633_v29, %v2566_v45 }
 0x18f   :  { %v2625_v24 = vpop.f32.mrf.mxu1 }
 0x190   :  { %v564_v25 = vmul.f32 %v554_v42, %v2625_v24  ;;  %v1037_v28 = vpack.c.bf16 %v2625_v24, %v2617_v19  ;;  %v632_v30 = vmul.f32 %v2562_v43, %v2625_v24  ;;  %v455_v36 = vmul.f32 %v445_v61, %v2625_v24 }
 0x191   :  { %v2073_v27 = vpop.f32.mrf.mxu1  ;;  %v543_v43 = vmul.f32 %v2610_v12, %v2564_v44 }
 0x192   :  { %587 = vrot.lane.b32.xlu0 %v564_v25, %s2362_s6  ;;  %653 = vrot.lane.b32.xlu1 %v631_v26, %s2362_s6  ;;  %v616_v26 = vmul.f32 %v2640_v32, %v2572_v51 }
 0x196   :  { %655 = vrot.lane.b32.xlu0 %v632_v30, %s2362_s6  ;;  %472 = vrot.lane.b32.xlu1 %v452_v31, %s2362_s6 }
 0x19a   :  { %474 = vrot.lane.b32.xlu0 %v453_v33, %s2362_s6  ;;  %476 = vrot.lane.b32.xlu1 %v454_v34, %s2362_s6  ;;  %v545_v34 = vmul.f32 %v2610_v12, %v2591_v0 }
 0x19e   :  { %478 = vrot.lane.b32.xlu0 %v455_v36, %s2362_s6  ;;  %400 = vrot.lane.b32.xlu1 %v384_v37, %s2362_s6  ;;  %v546_v37 = vmul.f32 %v2621_v22, %v2597_v4 }
 0x1a2   :  { %404 = vrot.lane.b32.xlu1 %v386_v39, %s2362_s6  ;;  %402 = vrot.lane.b32.xlu0 %v385_v40, %s2362_s6  ;;  %v389_v39 = vmul.f32 %v2651_v38, %v2572_v51 }
 0x1a6   :  { %406 = vrot.lane.b32.xlu0 %v387_v41, %s2362_s6 }
 0x1e0   :  { %v574_v42 = vpop.permute.xlu1 %573 }
 0x1e1   :  { %v597_v49 = vsub.f32 %v543_v43, %v574_v42 }
 0x1e4   :  { %v642_v47 = vpop.permute.xlu1 %641  ;;  %v576_v48 = vpop.permute.xlu0 %575 }
 0x1e5   :  { %v598_v52 = vsub.f32 %v544_v46, %v576_v48  ;;  %v665_v58 = vadd.f32 %v642_v47, %v611_v53  ;;  %v613_v46 = vmul.f32 %v2633_v29, %v2591_v0  ;;  %v614_v48 = vmul.f32 %v2640_v32, %v2597_v4 }
 0x1e7   :  { %v2157_v54 = vpack.i.bf16 %v598_v52, %v597_v49 }
 0x1e8   :  { %v465_v56 = vpop.permute.xlu1 %464  ;;  %v644_v57 = vpop.permute.xlu0 %643 }
 0x1e9   :  { %v666_v61 = vadd.f32 %v644_v57, %v612_v55  ;;  %2158 = vrot.lane.b32.xlu1 %v2157_v54, %s2363_s19  ;;  %v488_v5 = vadd.f32 %v465_v56, %v432_v62  ;;  %v434_v55 = vmul.f32 %v2591_v0, %v2480_v15  ;;  %v435_v57 = vmul.f32 %v2597_v4, %v2491_v17 }
 0x1eb   :  { %v2162_v63 = vpack.i.bf16 %v666_v61, %v665_v58  ;;  %v388_v58 = vmul.f32 %v2644_v35, %v2566_v45 }
 0x1ec   :  { %v582_v2 = vpop.permute.xlu1 %581  ;;  %v467_v3 = vpop.permute.xlu0 %466 }
 0x1ed   :  { %v489_v6 = vadd.f32 %v467_v3, %v433_v1  ;;  %2163 = vrot.lane.b32.xlu0 %v2162_v63, %s2362_s6  ;;  %v601_v20 = vsub.f32 %v547_v7, %v582_v2  ;;  %v549_v2 = vmul.f32 %v2610_v12, %v2617_v19 }
 0x1ef   :  { %v2167_v10 = vpack.i.bf16 %v489_v6, %v488_v5  ;;  %v550_v5 = vmul.f32 %v2621_v22, %v2625_v24  ;;  %v436_v22 = vmul.f32 %v2566_v45, %v2480_v15 }
 0x1f0   :  { %v650_v13 = vpop.permute.xlu1 %649  ;;  %v584_v14 = vpop.permute.xlu0 %583 }
 0x1f1   :  { %v602_v21 = vsub.f32 %v548_v11, %v584_v14  ;;  %2168 = vrot.lane.b32.xlu1 %v2167_v10, %s2361_s23  ;;  %v669_v31 = vadd.f32 %v650_v13, %v615_v23  ;;  %v617_v13 = vmul.f32 %v2633_v29, %v2617_v19  ;;  %v390_v29 = vmul.f32 %v2644_v35, %v2617_v19 }
 0x1f3   :  { %v2172_v25 = vpack.i.bf16 %v602_v21, %v601_v20  ;;  %v618_v20 = vmul.f32 %v2640_v32, %v2625_v24 }
 0x1f4   :  { %v578_v27 = vpop.permute.xlu1 %577  ;;  %v652_v30 = vpop.permute.xlu0 %651 }
 0x1f5   :  { %v670_v33 = vadd.f32 %v652_v30, %v616_v26  ;;  %2173 = vrot.lane.b32.xlu0 %v2172_v25, %s2363_s19  ;;  %v599_v42 = vsub.f32 %v545_v34, %v578_v27  ;;  %v437_v27 = vmul.f32 %v2572_v51, %v2491_v17  ;;  %v438_v34 = vmul.f32 %v2617_v19, %v2480_v15 }
 0x1f7   :  { %v2177_v36 = vpack.i.bf16 %v670_v33, %v669_v31 }
 0x1f8   :  { %v646_v40 = vpop.permute.xlu1 %645  ;;  %v580_v41 = vpop.permute.xlu0 %579 }
 0x1f9   :  { %v600_v43 = vsub.f32 %v546_v37, %v580_v41  ;;  %410 = vrot.lane.b32.xlu0 %v389_v39, %s2362_s6  ;;  %2178 = vrot.lane.b32.xlu1 %v2177_v36, %s2362_s6  ;;  %v667_v53 = vadd.f32 %v646_v40, %v613_v46  ;;  %v439_v37 = vmul.f32 %v2625_v24, %v2491_v17 }
 0x1fa   :  { %v391_v39 = vmul.f32 %v2651_v38, %v2625_v24 }
 0x1fb   :  { %v2182_v47 = vpack.i.bf16 %v600_v43, %v599_v42 }
 0x1fc   :  { %v469_v49 = vpop.permute.xlu1 %468  ;;  %v648_v52 = vpop.permute.xlu0 %647 }
 0x1fd   :  { %v668_v54 = vadd.f32 %v648_v52, %v614_v48  ;;  %2183 = vrot.lane.b32.xlu1 %v2182_v47, %s2363_s19  ;;  %v490_v63 = vadd.f32 %v469_v49, %v434_v55  ;;  %v369_v55 = vmul.f32 %v2570_v50, %v2498_v18 }
 0x1ff   :  { %v2187_v56 = vpack.i.bf16 %v668_v54, %v667_v53  ;;  %v368_v54 = vmul.f32 %v2564_v44, %v2486_v16 }
 0x200   :  { %v586_v61 = vpop.permute.xlu1 %585  ;;  %v471_v62 = vpop.permute.xlu0 %470 }
 0x201   :  { %v491_v1 = vadd.f32 %v471_v62, %v435_v57  ;;  %408 = vrot.lane.b32.xlu1 %v388_v58, %s2362_s6  ;;  %2188 = vrot.lane.b32.xlu0 %v2187_v56, %s2362_s6  ;;  %v603_v10 = vsub.f32 %v549_v2, %v586_v61 }
 0x203   :  { %v2192_v3 = vpack.i.bf16 %v491_v1, %v490_v63 }
 0x204   :  { %v654_v6 = vpop.permute.xlu1 %653  ;;  %v588_v7 = vpop.permute.xlu0 %587 }
 0x205   :  { %v604_v11 = vsub.f32 %v550_v5, %v588_v7  ;;  %2193 = vrot.lane.b32.xlu0 %v2192_v3, %s2361_s23  ;;  %v671_v12 = vadd.f32 %v654_v6, %v617_v13 }
 0x207   :  { %v2197_v14 = vpack.i.bf16 %v604_v11, %v603_v10 }
 0x208   :  { %v473_v21 = vpop.permute.xlu1 %472  ;;  %v656_v23 = vpop.permute.xlu0 %655 }
 0x209   :  { %v672_v25 = vadd.f32 %v656_v23, %v618_v20  ;;  %2198 = vrot.lane.b32.xlu1 %v2197_v14, %s2363_s19  ;;  %v492_v31 = vadd.f32 %v473_v21, %v436_v22 }
 0x20b   :  { %v2202_v26 = vpack.i.bf16 %v672_v25, %v671_v12 }
 0x20c   :  { %v475_v30 = vpop.permute.xlu0 %474  ;;  %v477_v32 = vpop.permute.xlu1 %476 }
 0x20d   :  { %v493_v33 = vadd.f32 %v475_v30, %v437_v27  ;;  %412 = vrot.lane.b32.xlu1 %v390_v29, %s2362_s6  ;;  %2203 = vrot.lane.b32.xlu0 %v2202_v26, %s2362_s6  ;;  %v494_v35 = vadd.f32 %v477_v32, %v438_v34  ;;  %v370_v34 = vmul.f32 %v2591_v0, %v2486_v16 }
 0x20f   :  { %v2207_v36 = vpack.i.bf16 %v493_v33, %v492_v31 }
 0x210   :  { %v479_v40 = vpop.permute.xlu0 %478  ;;  %v401_v43 = vpop.permute.xlu1 %400 }
 0x211   :  { %v495_v41 = vadd.f32 %v479_v40, %v439_v37  ;;  %414 = vrot.lane.b32.xlu0 %v391_v39, %s2362_s6  ;;  %2208 = vrot.lane.b32.xlu1 %v2207_v36, %s2361_s23  ;;  %v424_v62 = vsub.f32 %v368_v54, %v401_v43  ;;  %v371_v36 = vmul.f32 %v2597_v4, %v2498_v18 }
 0x213   :  { %v2212_v42 = vpack.i.bf16 %v495_v41, %v494_v35 }
 0x214   :  { %v403_v46 = vpop.permute.xlu0 %402  ;;  %v405_v15 = vpop.permute.xlu1 %404 }
 0x215   :  { %2213 = vrot.lane.b32.xlu0 %v2212_v42, %s2361_s23  ;;  %v425_v63 = vsub.f32 %v369_v55, %v403_v46  ;;  %v426_v42 = vsub.f32 %v370_v34, %v405_v15  ;;  %v44_v34 = vld [vmem:[%s3002_s3 + $0x8] sm:$0xff] }
 0x218   :  { %v407_v47 = vpop.permute.xlu0 %406 }
 0x219   :  { %v427_v43 = vsub.f32 %v371_v36, %v407_v47  ;;  %v373_v47 = vmul.f32 %v2572_v51, %v2498_v18 }
 0x25b   :  { %v2159_v48 = vpop.permute.xlu1 %2158 }
 0x25c   :  { %v2161_v49 = vunpack.i.h.bf16 %v2159_v48  ;;  %v2160_v52 = vunpack.i.l.bf16 %v2159_v48 }
 0x25f   :  { %v2164_v17 = vpop.permute.xlu0 %2163 }
 0x260   :  { %v2166_v38 = vunpack.i.h.bf16 %v2164_v17  ;;  %v2165_v53 = vunpack.i.l.bf16 %v2164_v17 }
 0x262   :  { %v738_v56 = vsel %vm528_vm2, %v2161_v49, %v2166_v38  ;;  %v737_v57 = vsel %vm528_vm2, %v2160_v52, %v2165_v53 }
 0x263   :  { %v2169_v58 = vpop.permute.xlu1 %2168  ;;  %v749_v61 = vpack.c.bf16 %v738_v56, %v737_v57 }
 0x264   :  { %v2171_v1 = vunpack.i.h.bf16 %v2169_v58  ;;  %v2170_v2 = vunpack.i.l.bf16 %v2169_v58 }
 0x265   :  { %v758_v3 = vsel %vm753_vm3, %v749_v61, 0  ;;  %v372_v61 = vmul.f32 %v2566_v45, %v2486_v16 }
 0x266   :  { %v529_v5 = vsel %vm528_vm2, %v424_v62, %v2170_v2  ;;  %v530_v6 = vsel %vm528_vm2, %v425_v63, %v2171_v1  ;;  %2075 = vmatpush3.bf16.xpose.msra.mxu0 %v758_v3 }
 0x267   :  { %v745_v7 = vpack.c.bf16 %v530_v6, %v529_v5  ;;  %2086 = vmatprep.subr.bf16.mxu0 %v2357_v8  ;;  %v2174_v10 = vpop.permute.xlu0 %2173 }
 0x268   :  { %v2176_v13 = vunpack.i.h.bf16 %v2174_v10  ;;  %v2175_v14 = vunpack.i.l.bf16 %v2174_v10 }
 0x26b   :  { %v2179_v11 = vpop.permute.xlu1 %2178  ;;  %v411_v25 = vpop.permute.xlu0 %410 }
 0x26c   :  { %v2181_v20 = vunpack.i.h.bf16 %v2179_v11  ;;  %v2180_v21 = vunpack.i.l.bf16 %v2179_v11  ;;  %v429_v5 = vsub.f32 %v373_v47, %v411_v25 }
 0x26d   :  { %2077 = vmatmul.mubr.msk.bf16.vlgmr.msra.gmra.mxu0 %vm753_vm3, %v745_v7 }
 0x26e   :  { %v741_v23 = vsel %vm528_vm2, %v2175_v14, %v2180_v21  ;;  %v742_v12 = vsel %vm528_vm2, %v2176_v13, %v2181_v20  ;;  %2088 = vmatprep.mubr.msk.bf16.mxu0 %vm2358_vm1, %v2357_v8  ;;  %v374_v13 = vmul.f32 %v2617_v19, %v2486_v16  ;;  %v375_v21 = vmul.f32 %v2625_v24, %v2498_v18  ;;  %v43_v18 = vld [vmem:[%s3002_s3] sm:$0xff]  ;;  %s2364_s3 = smov 96  }
 0x26f   :  { %v751_v22 = vpack.c.bf16 %v742_v12, %v741_v23  ;;  %v2184_v26 = vpop.permute.xlu1 %2183 }
 0x270   :  { %v2186_v30 = vunpack.i.h.bf16 %v2184_v26  ;;  %v2185_v31 = vunpack.i.l.bf16 %v2184_v26 }
 0x271   :  { %v852_v27 = vsel %vm753_vm3, %v751_v22, 0 }
 0x272   :  { %2087 = vmatpush3.bf16.xpose.msra.mxu0 %v852_v27 }
 0x273   :  { %v2189_v29 = vpop.permute.xlu0 %2188  ;;  %2098 = vmatprep.subr.bf16.mxu0 %v2357_v8  ;;  %v409_v40 = vpop.permute.xlu1 %408 }
 0x274   :  { %v2191_v33 = vunpack.i.h.bf16 %v2189_v29  ;;  %v2190_v32 = vunpack.i.l.bf16 %v2189_v29  ;;  %v428_v6 = vsub.f32 %v372_v61, %v409_v40 }
 0x276   :  { %v740_v37 = vsel %vm528_vm2, %v2186_v30, %v2191_v33  ;;  %v739_v39 = vsel %vm528_vm2, %v2185_v31, %v2190_v32 }
 0x277   :  { %v2194_v35 = vpop.permute.xlu0 %2193  ;;  %v750_v41 = vpack.c.bf16 %v740_v37, %v739_v39 }
 0x278   :  { %v2196_v46 = vunpack.i.h.bf16 %v2194_v35  ;;  %v2195_v48 = vunpack.i.l.bf16 %v2194_v35 }
 0x279   :  { %v805_v17 = vsel %vm753_vm3, %v750_v41, 0 }
 0x27a   :  { %v532_v49 = vsel %vm528_vm2, %v427_v43, %v2196_v46  ;;  %v531_v52 = vsel %vm528_vm2, %v426_v42, %v2195_v48  ;;  %2081 = vmatpush3.bf16.xpose.msra.mxu1 %v805_v17 }
 0x27b   :  { %v746_v38 = vpack.c.bf16 %v532_v49, %v531_v52  ;;  %v2199_v53 = vpop.permute.xlu1 %2198  ;;  %2092 = vmatprep.subr.bf16.mxu1 %v2357_v8 }
 0x27c   :  { %v2201_v56 = vunpack.i.h.bf16 %v2199_v53  ;;  %v2200_v57 = vunpack.i.l.bf16 %v2199_v53 }
 0x27f   :  { %v413_v54 = vpop.permute.xlu1 %412  ;;  %v2204_v55 = vpop.permute.xlu0 %2203 }
 0x280   :  { %v2206_v58 = vunpack.i.h.bf16 %v2204_v55  ;;  %v2205_v15 = vunpack.i.l.bf16 %v2204_v55  ;;  %v430_v25 = vsub.f32 %v374_v13, %v413_v54 }
 0x281   :  { %2083 = vmatmul.mubr.msk.bf16.vlgmr.msra.gmra.mxu1 %vm753_vm3, %v746_v38 }
 0x282   :  { %v744_v62 = vsel %vm528_vm2, %v2201_v56, %v2206_v58  ;;  %v743_v63 = vsel %vm528_vm2, %v2200_v57, %v2205_v15  ;;  %2094 = vmatprep.mubr.msk.bf16.mxu1 %vm2358_vm1, %v2357_v8 }
 0x283   :  { %v2209_v1 = vpop.permute.xlu1 %2208  ;;  %v415_v2 = vpop.permute.xlu0 %414  ;;  %v752_v3 = vpack.c.bf16 %v744_v62, %v743_v63 }
 0x284   :  { %v2211_v7 = vunpack.i.h.bf16 %v2209_v1  ;;  %v2210_v10 = vunpack.i.l.bf16 %v2209_v1  ;;  %v431_v22 = vsub.f32 %v375_v21, %v415_v2 }
 0x285   :  { %v899_v11 = vsel %vm753_vm3, %v752_v3, 0 }
 0x286   :  { %v533_v14 = vsel %vm528_vm2, %v428_v6, %v2210_v10  ;;  %v534_v20 = vsel %vm528_vm2, %v429_v5, %v2211_v7  ;;  %2093 = vmatpush3.bf16.xpose.msra.mxu1 %v899_v11 }
 0x287   :  { %v747_v23 = vpack.c.bf16 %v534_v20, %v533_v14  ;;  %v2214_v12 = vpop.permute.xlu0 %2213  ;;  %2104 = vmatprep.subr.bf16.mxu1 %v2357_v8 }
 0x288   :  { %v2216_v26 = vunpack.i.h.bf16 %v2214_v12  ;;  %v2215_v27 = vunpack.i.l.bf16 %v2214_v12 }
 0x289   :  { %2089 = vmatmul.mubr.msk.bf16.vlgmr.msra.gmra.mxu0 %vm753_vm3, %v747_v23 }
 0x28a   :  { %v536_v16 = vsel %vm528_vm2, %v431_v22, %v2216_v26  ;;  %v535_v29 = vsel %vm528_vm2, %v430_v25, %v2215_v27  ;;  %2100 = vmatprep.mubr.msk.bf16.mxu0 %vm2358_vm1, %v2357_v8 }
 0x28b   :  { %v748_v30 = vpack.c.bf16 %v536_v16, %v535_v29 }
 0x28d   :  { %2095 = vmatmul.mubr.msk.bf16.vlgmr.msra.gmra.mxu1 %vm753_vm3, %v748_v30 }
 0x28e   :  { %2106 = vmatprep.mubr.msk.bf16.mxu1 %vm2358_vm1, %v2357_v8 }
 0x32d   :  { %v794_v31 = vpop.f32.mrf.mxu0 }
 0x32e   :  { %v795_v33 = vadd.f32 %v794_v31, %v43_v18 }
 0x32f   :  { %v2078_v32 = vpop.f32.mrf.mxu0 }
 0x330   :  { %v942_v36 = vsel %vm753_vm3, %v795_v33, -inf }
 0x331   :  { %943 = vmax.xlane.f32.xlu1 %v942_v36  ;;  %v797_v37 = vpop.f32.mrf.mxu0 }
 0x332   :  { %v798_v39 = vadd.f32 %v797_v37, %v44_v34 }
 0x333   :  { %v2079_v40 = vpop.f32.mrf.mxu0 }
 0x334   :  { %v945_v35 = vsel %vm753_vm3, %v798_v39, -inf }
 0x335   :  { %946 = vmax.xlane.f32.xlu0 %v945_v35 }
 0x341   :  { %v841_v41 = vpop.f32.mrf.mxu1 }
 0x342   :  { %v842_v42 = vadd.f32 %v841_v41, %v43_v18 }
 0x343   :  { %v2084_v43 = vpop.f32.mrf.mxu1 }
 0x344   :  { %v948_v46 = vsel %vm753_vm3, %v842_v42, -inf }
 0x345   :  { %v844_v48 = vpop.f32.mrf.mxu1  ;;  %949 = vmax.xlane.f32.xlu0 %v948_v46 }
 0x346   :  { %v845_v17 = vadd.f32 %v844_v48, %v44_v34 }
 0x347   :  { %v2085_v49 = vpop.f32.mrf.mxu1 }
 0x348   :  { %v951_v52 = vsel %vm753_vm3, %v845_v17, -inf }
 0x349   :  { %952 = vmax.xlane.f32.xlu1 %v951_v52  ;;  %v888_v38 = vpop.f32.mrf.mxu0 }
 0x34a   :  { %v889_v53 = vadd.f32 %v888_v38, %v43_v18 }
 0x34b   :  { %v2090_v54 = vpop.f32.mrf.mxu0 }
 0x34c   :  { %v954_v55 = vsel %vm753_vm3, %v889_v53, -inf }
 0x34d   :  { %v935_v56 = vpop.f32.mrf.mxu1  ;;  %955 = vmax.xlane.f32.xlu0 %v954_v55  ;;  %v891_v57 = vpop.f32.mrf.mxu0 }
 0x34e   :  { %v936_v58 = vadd.f32 %v935_v56, %v43_v18  ;;  %v892_v15 = vadd.f32 %v891_v57, %v44_v34 }
 0x34f   :  { %v2091_v47 = vpop.f32.mrf.mxu0  ;;  %v2096_v61 = vpop.f32.mrf.mxu1 }
 0x350   :  { %v960_v62 = vsel %vm753_vm3, %v936_v58, -inf  ;;  %v957_v63 = vsel %vm753_vm3, %v892_v15, -inf }
 0x351   :  { %v938_v1 = vpop.f32.mrf.mxu1  ;;  %961 = vmax.xlane.f32.xlu0 %v960_v62  ;;  %958 = vmax.xlane.f32.xlu1 %v957_v63 }
 0x352   :  { %v939_v2 = vadd.f32 %v938_v1, %v44_v34 }
 0x353   :  { %v2097_v3 = vpop.f32.mrf.mxu1 }
 0x354   :  { %v963_v5 = vsel %vm753_vm3, %v939_v2, -inf }
 0x355   :  { %964 = vmax.xlane.f32.xlu1 %v963_v5 }
 0x366   :  { %1087 = vrot.lane.b32.xlu1 %v1035_v9, %s2364_s3 }
 0x367   :  { %1039 = vrot.lane.b32.xlu0 %v1034_v59, %s2364_s3 }
 0x3ba   :  { %v944_v6 = vpop.xlane.xlu1 %943 }
 0x3bb   :  { %v966_v7 = vsub.f32 %v795_v33, %v944_v6 }
 0x3bd   :  { %v974_v10 = vmul.f32 1.442695, %v966_v7 }
 0x3be   :  { %v947_v11 = vpop.xlane.xlu0 %946 }
 0x3bf   :  { %2281 = vpow2.f32 %v974_v10  ;;  %v967_v13 = vsub.f32 %v798_v39, %v947_v11 }
 0x3c1   :  { %v976_v14 = vmul.f32 1.442695, %v967_v13 }
 0x3c3   :  { %2283 = vpow2.f32 %v976_v14 }
 0x3cc   :  { %v2282_v20 = vpop.eup %2281 }
 0x3cd   :  { %v990_v21 = vsel %vm753_vm3, %v2282_v20, 0.0 }
 0x3ce   :  { %991 = vadd.xlane.f32.xlu0 %v990_v21  ;;  %v950_v4 = vpop.xlane.xlu0 %949 }
 0x3cf   :  { %v968_v9 = vsub.f32 %v842_v42, %v950_v4  ;;  %v2234_v4 = vld [vmem:[%s3006_s7 + $0x8] sm:$0xff]  }
 0x3d0   :  { %v2284_v23 = vpop.eup %2283 }
 0x3d1   :  { %v993_v0 = vsel %vm753_vm3, %v2284_v23, 0.0  ;;  %v978_v12 = vmul.f32 1.442695, %v968_v9 }
 0x3d2   :  { %994 = vadd.xlane.f32.xlu1 %v993_v0  ;;  %v953_v44 = vpop.xlane.xlu1 %952  ;;  %v2233_v0 = vld [vmem:[%s3006_s7] sm:$0xff]  }
 0x3d3   :  { %v969_v22 = vsub.f32 %v845_v17, %v953_v44 }
 0x3d5   :  { %v980_v31 = vmul.f32 1.442695, %v969_v22 }
 0x3d6   :  { %v956_v50 = vpop.xlane.xlu0 %955 }
 0x3d7   :  { %v970_v59 = vsub.f32 %v889_v53, %v956_v50 }
 0x3d9   :  { %v982_v25 = vmul.f32 1.442695, %v970_v59  ;;  %v2235_v59 = vld [vmem:[%s3006_s7 + $0x10] sm:$0xff]  }
 0x3da   :  { %v962_v26 = vpop.xlane.xlu0 %961  ;;  %v959_v27 = vpop.xlane.xlu1 %958 }
 0x3db   :  { %2285 = vpow2.f32 %v982_v25  ;;  %v972_v16 = vsub.f32 %v936_v58, %v962_v26  ;;  %v971_v29 = vsub.f32 %v892_v15, %v959_v27 }
 0x3dc   :  { %2287 = vpow2.f32 %v978_v12 }
 0x3dd   :  { %v986_v30 = vmul.f32 1.442695, %v972_v16  ;;  %v984_v18 = vmul.f32 1.442695, %v971_v29 }
 0x3de   :  { %v1040_v33 = vpop.permute.xlu0 %1039  ;;  %v965_v32 = vpop.xlane.xlu1 %964 }
 0x3df   :  { %v973_v34 = vsub.f32 %v939_v2, %v965_v32  ;;  %2099 = vmatpush3.bf16.msra.mxu0 %v1040_v33  ;;  %2289 = vpow2.f32 %v984_v18  ;;  %v2236_v33 = vld [vmem:[%s3006_s7 + $0x18] sm:$0xff]  }
 0x3e0   :  { %2110 = vmatprep.subr.bf16.mxu0 %v2357_v8  ;;  %2291 = vpow2.f32 %v986_v30 }
 0x3e1   :  { %2293 = vpow2.f32 %v980_v31  ;;  %v988_v36 = vmul.f32 1.442695, %v973_v34 }
 0x3e2   :  { %v1088_v37 = vpop.permute.xlu1 %1087 }
 0x3e3   :  { %2105 = vmatpush3.bf16.msra.mxu1 %v1088_v37  ;;  %2295 = vpow2.f32 %v988_v36 }
 0x3e4   :  { %2116 = vmatprep.subr.bf16.mxu1 %v2357_v8 }
 0x3e8   :  { %v2286_v39 = vpop.eup %2285 }
 0x3e9   :  { %v1002_v40 = vsel %vm753_vm3, %v2286_v39, 0.0  ;;  %v2288_v35 = vpop.eup %2287 }
 0x3ea   :  { %1003 = vadd.xlane.f32.xlu0 %v1002_v40  ;;  %v996_v42 = vsel %vm753_vm3, %v2288_v35, 0.0 }
 0x3ec   :  { %v2290_v41 = vpop.eup %2289 }
 0x3ed   :  { %v2292_v43 = vpop.eup %2291  ;;  %v1005_v46 = vsel %vm753_vm3, %v2290_v41, 0.0 }
 0x3ee   :  { %997 = vadd.xlane.f32.xlu0 %v996_v42  ;;  %v2294_v48 = vpop.eup %2293  ;;  %1006 = vadd.xlane.f32.xlu1 %v1005_v46  ;;  %v1008_v17 = vsel %vm753_vm3, %v2292_v43, 0.0 }
 0x3ef   :  { %v999_v49 = vsel %vm753_vm3, %v2294_v48, 0.0 }
 0x3f0   :  { %v2296_v52 = vpop.eup %2295 }
 0x3f1   :  { %v1011_v38 = vsel %vm753_vm3, %v2296_v52, 0.0 }
 0x3f2   :  { %1009 = vadd.xlane.f32.xlu0 %v1008_v17  ;;  %1000 = vadd.xlane.f32.xlu1 %v999_v49 }
 0x3f6   :  { %1012 = vadd.xlane.f32.xlu1 %v1011_v38 }
 0x407   :  { %1135 = vrot.lane.b32.xlu1 %v1036_v60, %s2364_s3 }
 0x408   :  { %1183 = vrot.lane.b32.xlu0 %v1037_v28, %s2364_s3 }
 0x457   :  { %v992_v53 = vpop.xlane.xlu0 %991 }
 0x458   :  { %2297 = vrcp.f32 %v992_v53 }
 0x45b   :  { %v995_v54 = vpop.xlane.xlu1 %994 }
 0x45c   :  { %2299 = vrcp.f32 %v995_v54 }
 0x465   :  { %v2298_v55 = vpop.eup %2297 }
 0x466   :  { %v1022_v57 = vmul.f32 %v2298_v55, %v2282_v20 }
 0x469   :  { %v2300_v56 = vpop.eup %2299 }
 0x46a   :  { %v1023_v58 = vmul.f32 %v2300_v56, %v2284_v23 }
 0x46c   :  { %v1030_v15 = vpack.c.bf16 %v1023_v58, %v1022_v57 }
 0x46e   :  { %2101 = vmatmul.mubr.msk.bf16.vlgmr.msra.gmra.mxu0 %vm753_vm3, %v1030_v15 }
 0x46f   :  { %2112 = vmatprep.mubr.msk.bf16.mxu0 %vm2358_vm1, %v2357_v8 }
 0x473   :  { %v1004_v45 = vpop.xlane.xlu0 %1003 }
 0x474   :  { %2301 = vrcp.f32 %v1004_v45 }
 0x477   :  { %v998_v51 = vpop.xlane.xlu0 %997  ;;  %v1007_v60 = vpop.xlane.xlu1 %1006 }
 0x478   :  { %2303 = vrcp.f32 %v1007_v60 }
 0x479   :  { %2305 = vrcp.f32 %v998_v51 }
 0x47b   :  { %v1001_v19 = vpop.xlane.xlu1 %1000  ;;  %v1010_v24 = vpop.xlane.xlu0 %1009 }
 0x47c   :  { %2307 = vrcp.f32 %v1001_v19 }
 0x47f   :  { %v1013_v28 = vpop.xlane.xlu1 %1012  ;;  %v1184_v13 = vpop.permute.xlu0 %1183 }
 0x480   :  { %2309 = vrcp.f32 %v1013_v28 }
 0x481   :  { %2311 = vrcp.f32 %v1010_v24  ;;  %v2302_v47 = vpop.eup %2301 }
 0x482   :  { %v1026_v63 = vmul.f32 %v2302_v47, %v2286_v39 }
 0x483   :  { %v1136_v61 = vpop.permute.xlu1 %1135 }
 0x484   :  { %2111 = vmatpush3.bf16.msra.mxu0 %v1136_v61 }
 0x485   :  { %v2304_v62 = vpop.eup %2303  ;;  %2122 = vmatprep.subr.bf16.mxu0 %v2357_v8 }
 0x486   :  { %v1027_v1 = vmul.f32 %v2304_v62, %v2290_v41  ;;  %v2306_v2 = vpop.eup %2305  ;;  %v2333_v62 = vld [vmem:[%s2999_s0] sm:$0xff] }
 0x487   :  { %v1024_v6 = vmul.f32 %v2306_v2, %v2288_v35 }
 0x488   :  { %v1032_v3 = vpack.c.bf16 %v1027_v1, %v1026_v63 }
 0x489   :  { %v2308_v5 = vpop.eup %2307 }
 0x48a   :  { %2113 = vmatmul.mubr.msk.bf16.vlgmr.msra.gmra.mxu0 %vm753_vm3, %v1032_v3  ;;  %v1025_v7 = vmul.f32 %v2308_v5, %v2294_v48 }
 0x48b   :  { %2124 = vmatprep.mubr.msk.bf16.mxu0 %vm2358_vm1, %v2357_v8  ;;  %2123 = vmatpush3.bf16.msra.mxu0 %v2233_v0  ;;  %v2237_v0 = vld [vmem:[%s3007_s8 + $0x60] ss:$16 sps:$4 sm:$0xff]  }
 0x48c   :  { %v1031_v10 = vpack.c.bf16 %v1025_v7, %v1024_v6  ;;  %2134 = vmatprep.subr.bf16.mxu0 %v2357_v8 }
 0x48d   :  { %v2310_v11 = vpop.eup %2309 }
 0x48e   :  { %2107 = vmatmul.mubr.msk.bf16.vlgmr.msra.gmra.mxu1 %vm753_vm3, %v1031_v10  ;;  %v2312_v14 = vpop.eup %2311  ;;  %v1029_v20 = vmul.f32 %v2310_v11, %v2296_v52  ;;  %v2334_v10 = vld [vmem:[%s2999_s0 + $0x8] sm:$0xff] }
 0x48f   :  { %2117 = vmatpush3.bf16.msra.mxu1 %v1184_v13  ;;  %2118 = vmatprep.mubr.msk.bf16.mxu1 %vm2358_vm1, %v2357_v8  ;;  %v1028_v21 = vmul.f32 %v2312_v14, %v2292_v43 }
 0x490   :  { %2128 = vmatprep.subr.bf16.mxu1 %v2357_v8 }
 0x491   :  { %v1033_v23 = vpack.c.bf16 %v1029_v20, %v1028_v21  ;;  %v2239_v21 = vld [vmem:[%s3007_s8 + $0x64] ss:$16 sps:$4 sm:$0xff]  }
 0x496   :  { %2119 = vmatmul.mubr.msk.bf16.vlgmr.msra.gmra.mxu1 %vm753_vm3, %v1033_v23  ;;  %v2242_v23 = vld [vmem:[%s3007_s8 + $0x6c] ss:$16 sps:$4 sm:$0xff]  }
 0x497   :  { %2130 = vmatprep.mubr.msk.bf16.mxu1 %vm2358_vm1, %v2357_v8  ;;  %2129 = vmatpush3.bf16.msra.mxu1 %v2234_v4  ;;  %v2240_v4 = vld [vmem:[%s3007_s8 + $0x68] ss:$16 sps:$4 sm:$0xff]  }
 0x498   :  { %2140 = vmatprep.subr.bf16.mxu1 %v2357_v8 }
 0x52e   :  { %v1079_v9 = vpop.f32.mrf.mxu0 }
 0x530   :  { %v2102_v44 = vpop.f32.mrf.mxu0 }
 0x531   :  { %v2248_v44 = vld [vmem:[%s3007_s8 + $0x4c] ss:$16 sps:$4 sm:$0xff]  }
 0x532   :  { %v1082_v50 = vpop.f32.mrf.mxu0 }
 0x533   :  { %v1230_v12 = vpack.c.bf16 %v1082_v50, %v1079_v9  ;;  %v2245_v9 = vld [vmem:[%s3007_s8 + $0x44] ss:$16 sps:$4 sm:$0xff]   ;;  %v2243_v50 = vld [vmem:[%s3007_s8 + $0x40] ss:$16 sps:$4 sm:$0xff]  }
 0x534   :  { %v2103_v25 = vpop.f32.mrf.mxu0 }
 0x535   :  { %2125 = vmatmul.mubr.msk.bf16.vlgmr.msra.gmra.mxu0 %vm753_vm3, %v1230_v12  ;;  %v2251_v12 = vld [vmem:[%s3007_s8 + $0x24] ss:$16 sps:$4 sm:$0xff]   ;;  %v2254_v25 = vld [vmem:[%s3007_s8 + $0x2c] ss:$16 sps:$4 sm:$0xff]  }
 0x536   :  { %2135 = vmatpush3.bf16.msra.mxu0 %v2235_v59  ;;  %2136 = vmatprep.mubr.msk.bf16.mxu0 %vm2358_vm1, %v2357_v8  ;;  %v2246_v59 = vld [vmem:[%s3007_s8 + $0x48] ss:$16 sps:$4 sm:$0xff]  }
 0x537   :  { %1591 = vmatprep.subr.bf16.mxu0 %v2239_v21 }
 0x54a   :  { %v1175_v22 = vpop.f32.mrf.mxu0 }
 0x54c   :  { %v2114_v26 = vpop.f32.mrf.mxu0 }
 0x54d   :  { %v2252_v26 = vld [vmem:[%s3007_s8 + $0x28] ss:$16 sps:$4 sm:$0xff]  }
 0x54e   :  { %v1127_v27 = vpop.f32.mrf.mxu1  ;;  %v1178_v16 = vpop.f32.mrf.mxu0 }
 0x54f   :  { %v1232_v29 = vpack.c.bf16 %v1178_v16, %v1175_v22  ;;  %v2249_v22 = vld [vmem:[%s3007_s8 + $0x20] ss:$16 sps:$4 sm:$0xff]   ;;  %v2260_v16 = vld [vmem:[%s3007_s8 + $0xc] ss:$16 sps:$4 sm:$0xff]  }
 0x550   :  { %v2108_v30 = vpop.f32.mrf.mxu1  ;;  %v2115_v18 = vpop.f32.mrf.mxu0 }
 0x551   :  { %2137 = vmatmul.mubr.msk.bf16.vlgmr.msra.gmra.mxu0 %vm753_vm3, %v1232_v29  ;;  %v2255_v29 = vld [vmem:[%s3007_s8] ss:$16 sps:$4 sm:$0xff]   ;;  %v2258_v30 = vld [vmem:[%s3007_s8 + $0x8] ss:$16 sps:$4 sm:$0xff]   ;;  %v2365_v18 = vmov 0  }
 0x552   :  { %v1130_v31 = vpop.f32.mrf.mxu1  ;;  %1592 = vmatpush1.bf16.msra.mxu0 %v2237_v0  ;;  %1615 = vmatprep.mubr.bf16.mxu0 %v2365_v18 }
 0x553   :  { %v1231_v32 = vpack.c.bf16 %v1130_v31, %v1127_v27  ;;  %1593 = vmatprep.subr.bf16.mxu0 %v2245_v9  ;;  %v2257_v27 = vld [vmem:[%s3007_s8 + $0x4] ss:$16 sps:$4 sm:$0xff]  }
 0x554   :  { %v2109_v34 = vpop.f32.mrf.mxu1 }
 0x555   :  { %2131 = vmatmul.mubr.msk.bf16.vlgmr.msra.gmra.mxu1 %vm753_vm3, %v1231_v32 }
 0x556   :  { %2141 = vmatpush3.bf16.msra.mxu1 %v2236_v33  ;;  %v1223_v36 = vpop.f32.mrf.mxu1  ;;  %2142 = vmatprep.mubr.msk.bf16.mxu1 %vm2358_vm1, %v2357_v8 }
 0x557   :  { %1634 = vmatprep.subr.bf16.mxu1 %v2242_v23  ;;  %1594 = vmatpush1.bf16.msra.mxu0 %v2243_v50 }
 0x558   :  { %v2120_v37 = vpop.f32.mrf.mxu1  ;;  %1595 = vmatprep.subr.bf16.mxu0 %v2251_v12 }
 0x55a   :  { %v1226_v39 = vpop.f32.mrf.mxu1 }
 0x55b   :  { %v1233_v40 = vpack.c.bf16 %v1226_v39, %v1223_v36  ;;  %1596 = vmatpush1.bf16.msra.mxu0 %v2249_v22 }
 0x55c   :  { %v2121_v35 = vpop.f32.mrf.mxu1  ;;  %1597 = vmatprep.subr.bf16.mxu0 %v2257_v27 }
 0x55d   :  { %2143 = vmatmul.mubr.msk.bf16.vlgmr.msra.gmra.mxu1 %vm753_vm3, %v1233_v40 }
 0x55e   :  { %1635 = vmatpush1.bf16.msra.mxu1 %v2240_v4  ;;  %1658 = vmatprep.mubr.bf16.mxu1 %v2365_v18 }
 0x55f   :  { %1636 = vmatprep.subr.bf16.mxu1 %v2248_v44  ;;  %1598 = vmatpush1.bf16.msra.mxu0 %v2255_v29 }
 0x562   :  { %1637 = vmatpush1.bf16.msra.mxu1 %v2246_v59 }
 0x563   :  { %1638 = vmatprep.subr.bf16.mxu1 %v2254_v25 }
 0x566   :  { %1639 = vmatpush1.bf16.msra.mxu1 %v2252_v26 }
 0x567   :  { %1640 = vmatprep.subr.bf16.mxu1 %v2260_v16 }
 0x56a   :  { %1641 = vmatpush1.bf16.msra.mxu1 %v2258_v30 }
 0x5f5   :  { %v1285_v41 = vpop.f32.mrf.mxu0 }
 0x5f6   :  { %v1442_v8 = vsel %vm47_vm0, %v1285_v41, 0.0  ;;  %v1925_v41 = vld [vmem:[%s3004_s5] ss:$0 sm:$0xff] }
 0x5f7   :  { %v2126_v42 = vpop.f32.mrf.mxu0 }
 0x5f9   :  { %v1288_v43 = vpop.f32.mrf.mxu0 }
 0x5fa   :  { %v1449_v15 = vsel %vm47_vm0, %v1288_v43, 0.0 }
 0x5fb   :  { %v2127_v46 = vpop.f32.mrf.mxu0 }
 0x611   :  { %v1385_v48 = vpop.f32.mrf.mxu0 }
 0x612   :  { %v1445_v45 = vsel %vm47_vm0, %v1385_v48, 0.0 }
 0x613   :  { %v2138_v17 = vpop.f32.mrf.mxu0 }
 0x614   :  { %v2261_v17 = vld [vmem:[%s3008_s9 + $0x78] sm:$0xff]  }
 0x615   :  { %v1335_v49 = vpop.f32.mrf.mxu1  ;;  %v1388_v52 = vpop.f32.mrf.mxu0  ;;  %2004 = vmatprep.subr.bf16.mxu0 %v2261_v17 }
 0x616   :  { %v1443_v38 = vsel %vm47_vm0, %v1335_v49, 0.0  ;;  %v1452_v61 = vsel %vm47_vm0, %v1388_v52, 0.0  ;;  %v2262_v49 = vld [vmem:[%s3008_s9 + $0x38] sm:$0xff]   ;;  %v2263_v52 = vld [vmem:[%s3008_s9 + $0x70] sm:$0xff]  }
 0x617   :  { %v2132_v53 = vpop.f32.mrf.mxu1  ;;  %v2139_v54 = vpop.f32.mrf.mxu0  ;;  %v1444_v55 = vadd.f32 %v1443_v38, %v1442_v8  ;;  %v2264_v38 = vld [vmem:[%s3008_s9 + $0x30] sm:$0xff]   ;;  %v2267_v8 = vld [vmem:[%s3008_s9 + $0x60] sm:$0xff]  }
 0x618   :  { %v2265_v53 = vld [vmem:[%s3008_s9 + $0x68] sm:$0xff]  }
 0x619   :  { %v1338_v56 = vpop.f32.mrf.mxu1  ;;  %v1446_v19 = vadd.f32 %v1445_v45, %v1444_v55  ;;  %v2266_v54 = vld [vmem:[%s3008_s9 + $0x28] sm:$0xff]   ;;  %v2268_v55 = vld [vmem:[%s3008_s9 + $0x20] sm:$0xff]  }
 0x61a   :  { %v1450_v57 = vsel %vm47_vm0, %v1338_v56, 0.0  ;;  %v2269_v56 = vld [vmem:[%s3008_s9 + $0x58] sm:$0xff]   ;;  %v2273_v45 = vld [vmem:[%s3008_s9 + $0x48] sm:$0xff]  }
 0x61b   :  { %v2133_v58 = vpop.f32.mrf.mxu1  ;;  %v1451_v51 = vadd.f32 %v1450_v57, %v1449_v15  ;;  %v2270_v57 = vld [vmem:[%s3008_s9 + $0x18] sm:$0xff]   ;;  %v2272_v15 = vld [vmem:[%s3008_s9 + $0x10] sm:$0xff]  }
 0x61c   :  { %v2271_v58 = vld [vmem:[%s3008_s9 + $0x50] sm:$0xff]  }
 0x61d   :  { %v1435_v60 = vpop.f32.mrf.mxu1  ;;  %v1453_v2 = vadd.f32 %v1452_v61, %v1451_v51  ;;  %v2274_v51 = vld [vmem:[%s3008_s9 + $0x8] sm:$0xff]  }
 0x61e   :  { %v1447_v24 = vsel %vm47_vm0, %v1435_v60, 0.0  ;;  %v2275_v60 = vld [vmem:[%s3008_s9 + $0x40] sm:$0xff]  }
 0x61f   :  { %v1448_v28 = vadd.f32 %v1447_v24, %v1446_v19  ;;  %v2144_v47 = vpop.f32.mrf.mxu1  ;;  %v2276_v19 = vld [vmem:[%s3008_s9] sm:$0xff]   ;;  %s2366_s9 = smov [#allocation2]  }
 0x620   :  { %s1877_s5 = sshll.u32 %s2366_s9, 4  ;;  %s1878_s5 = int_to_ptr.vmem [resolvable:$true] %s1877_s5 }
 0x621   :  { %v2874_v63 = vadd.f32 %v2333_v62, %v1448_v28  ;;  %v1438_v1 = vpop.f32.mrf.mxu1  ;;  %s2335_s22 = scalar_lea.vmem %s1878_s5, 256  ;;  %p2340_p1 = scmp.lt.s32.totalorder %s1878_s5, %s1878_s5 }
 0x622   :  { %v1454_v3 = vsel %vm47_vm0, %v1438_v1, 0.0  ;;  %p2336_p0 = scmp.ne.s32.totalorder %s1878_s5, %s2335_s22  ;;  %p2341_p2 = scmp.lt.s32.totalorder %s2335_s22, %s2335_s22 }
 0x623   :  { %v1455_v5 = vadd.f32 %v1454_v3, %v1453_v2  ;;  %v2145_v6 = vpop.f32.mrf.mxu1  ;;  %v1458_v7 = vmul.f32 %v2874_v63, %v2874_v63 }
 0x624   :  { %p2342_p3 = por %p2341_p2, %p2340_p1 }
 0x625   :  { %v2882_v11 = vadd.f32 %v2334_v10, %v1455_v5  ;;  %v1460_v13 = vsel %vm47_vm0, %v1458_v7, 0.0 }
 0x626   :  { %1461 = vadd.xlane.f32.xlu1 %v1460_v13  ;;  %p2343_p4 = pnand %p2342_p3, %p2336_p0 }
 0x627   :  { %v1459_v14 = vmul.f32 %v2882_v11, %v2882_v11 }
 0x629   :  { %v1463_v20 = vsel %vm47_vm0, %v1459_v14, 0.0 }
 0x62a   :  { %1464 = vadd.xlane.f32.xlu0 %v1463_v20 }
 0x6af   :  { %v1462_v31 = vpop.xlane.xlu1 %1461 }
 0x6b0   :  { %v1466_v33 = vmul.f32 0.015625, %v1462_v31 }
 0x6b2   :  { %v1468_v32 = vadd.f32 1e-05, %v1466_v33 }
 0x6b3   :  { %v1465_v34 = vpop.xlane.xlu0 %1464 }
 0x6b4   :  { %2313 = vrsqrt.f32 %v1468_v32  ;;  %v1467_v36 = vmul.f32 0.015625, %v1465_v34 }
 0x6b6   :  { %v1469_v37 = vadd.f32 1e-05, %v1467_v36 }
 0x6b8   :  { %2315 = vrsqrt.f32 %v1469_v37 }
 0x6c1   :  { %v2314_v39 = vpop.eup %2313 }
 0x6c2   :  { %v1472_v40 = vmul.f32 %v2314_v39, %v2874_v63 }
 0x6c4   :  { %v1481_v43 = vmul.f32 %v1925_v41, %v1472_v40 }
 0x6c5   :  { %v2316_v35 = vpop.eup %2315 }
 0x6c6   :  { %v1473_v42 = vmul.f32 %v2316_v35, %v2882_v11 }
 0x6c8   :  { %v1482_v46 = vmul.f32 %v1925_v41, %v1473_v42 }
 0x6ca   :  { %v1483_v48 = vpack.c.bf16 %v1482_v46, %v1481_v43 }
 0x6cc   :  { %1942 = vmatmul.mubr.msk.bf16.vlgmr.msra.gmra.mxu0 %vm47_vm0, %v1483_v48  ;;  %1943 = vmatmul.mubr.msk.bf16.vlgmr.msra.gmra.mxu1 %vm47_vm0, %v1483_v48 }
 0x6cd   :  { %2005 = vmatpush3.bf16.msra.mxu0 %v2262_v49 }
 0x6ce   :  { %2006 = vmatprep.subr.bf16.mxu0 %v2263_v52 }
 0x6d1   :  { %2007 = vmatpush3.bf16.msra.mxu0 %v2264_v38 }
 0x6d2   :  { %2008 = vmatprep.subr.bf16.mxu0 %v2265_v53 }
 0x6d5   :  { %2009 = vmatpush3.bf16.msra.mxu0 %v2266_v54 }
 0x6d6   :  { %2010 = vmatprep.subr.bf16.mxu0 %v2267_v8 }
 0x6d9   :  { %2011 = vmatpush3.bf16.msra.mxu0 %v2268_v55 }
 0x6da   :  { %2012 = vmatprep.subr.bf16.mxu0 %v2269_v56 }
 0x6dd   :  { %2013 = vmatpush3.bf16.msra.mxu0 %v2270_v57 }
 0x6de   :  { %2014 = vmatprep.subr.bf16.mxu0 %v2271_v58 }
 0x6e1   :  { %2015 = vmatpush3.bf16.msra.mxu0 %v2272_v15 }
 0x6e2   :  { %2016 = vmatprep.subr.bf16.mxu0 %v2273_v45 }
 0x6e5   :  { %2017 = vmatpush3.bf16.msra.mxu0 %v2274_v51 }
 0x6e6   :  { %2018 = vmatprep.subr.bf16.mxu0 %v2275_v60 }
 0x6e9   :  { %2019 = vmatpush3.bf16.msra.mxu0 %v2276_v19 }
 0x78c   :  { %v1617_v24 = vpop.f32.mrf.mxu0  ;;  %v1660_v44 = vpop.f32.mrf.mxu1 }
 0x78d   :  { %v1669_v28 = vsub.f32 0.0, %v1617_v24 }
 0x78e   :  { %v1619_v47 = vpop.f32.mrf.mxu0  ;;  %v1662_v50 = vpop.f32.mrf.mxu1 }
 0x78f   :  { %v1673_v61 = vmul.f32 1.442695, %v1669_v28  ;;  %v1670_v62 = vsub.f32 0.0, %v1619_v47 }
 0x790   :  { %v1621_v1 = vpop.f32.mrf.mxu0  ;;  %v1664_v22 = vpop.f32.mrf.mxu1 }
 0x791   :  { %2317 = vpow2.f32 %v1673_v61  ;;  %v1675_v2 = vmul.f32 1.442695, %v1670_v62  ;;  %v1671_v3 = vsub.f32 0.0, %v1621_v1 }
 0x792   :  { %v1623_v5 = vpop.f32.mrf.mxu0  ;;  %v1666_v31 = vpop.f32.mrf.mxu1 }
 0x793   :  { %2319 = vpow2.f32 %v1675_v2  ;;  %v1677_v6 = vmul.f32 1.442695, %v1671_v3  ;;  %v1672_v7 = vsub.f32 0.0, %v1623_v5 }
 0x795   :  { %2321 = vpow2.f32 %v1677_v6  ;;  %v1679_v10 = vmul.f32 1.442695, %v1672_v7 }
 0x797   :  { %2323 = vpow2.f32 %v1679_v10 }
 0x79e   :  { %v2318_v13 = vpop.eup %2317 }
 0x79f   :  { %v1681_v20 = vadd.f32 1.0, %v2318_v13 }
 0x7a0   :  { %v2320_v14 = vpop.eup %2319 }
 0x7a1   :  { %v1682_v21 = vadd.f32 1.0, %v2320_v14 }
 0x7a2   :  { %v2322_v23 = vpop.eup %2321 }
 0x7a3   :  { %2325 = vrcp.f32 %v1682_v21  ;;  %v1683_v0 = vadd.f32 1.0, %v2322_v23 }
 0x7a4   :  { %v2324_v4 = vpop.eup %2323  ;;  %2327 = vrcp.f32 %v1681_v20 }
 0x7a5   :  { %2329 = vrcp.f32 %v1683_v0  ;;  %v1684_v9 = vadd.f32 1.0, %v2324_v4 }
 0x7a7   :  { %2331 = vrcp.f32 %v1684_v9 }
 0x7b0   :  { %v2326_v59 = vpop.eup %2325 }
 0x7b1   :  { %v2328_v12 = vpop.eup %2327  ;;  %v1690_v26 = vmul.f32 %v2326_v59, %v1619_v47 }
 0x7b2   :  { %v2330_v25 = vpop.eup %2329  ;;  %v1689_v29 = vmul.f32 %v2328_v12, %v1617_v24 }
 0x7b3   :  { %v1691_v27 = vmul.f32 %v2330_v25, %v1621_v1  ;;  %v1694_v33 = vmul.f32 %v1690_v26, %v1662_v50 }
 0x7b4   :  { %v2332_v16 = vpop.eup %2331  ;;  %v1693_v34 = vmul.f32 %v1689_v29, %v1660_v44 }
 0x7b5   :  { %v1692_v30 = vmul.f32 %v2332_v16, %v1623_v5  ;;  %v1695_v18 = vmul.f32 %v1691_v27, %v1664_v22 }
 0x7b7   :  { %v1696_v32 = vmul.f32 %v1692_v30, %v1666_v31  ;;  %v1697_v37 = vpack.c.bf16 %v1695_v18, %v1693_v34 }
 0x7b9   :  { %v1698_v36 = vpack.c.bf16 %v1696_v32, %v1694_v33 }
 0x7bb   :  { %1859 = vmatprep.mubr.bf16.mxu0 %v1698_v36 }
 0x7bc   :  { %1860 = vmatmul.mubr.bf16.vlgmr.msra.gmra.mxu0 %v1697_v37 }
 0x87c   :  { %v2020_v39 = vpop.f32.mrf.mxu0 }
 0x87e   :  { %v2021_v40 = vpop.f32.mrf.mxu0 }
 0x87f   :  { %v2022_v35 = vadd.f32 %v2021_v40, %v2020_v39 }
 0x880   :  { %v2023_v41 = vpop.f32.mrf.mxu0 }
 0x881   :  { %v1868_v42 = vadd.f32 %v2022_v35, %v2874_v63 }
 0x882   :  { %v2024_v43 = vpop.f32.mrf.mxu0 }
 0x883   :  { %1870 = vst.msk [vmem:[#allocation2] sm:$0xff] %vm47_vm0, %v1868_v42  ;;  %v2025_v46 = vadd.f32 %v2024_v43, %v2023_v41 }
 0x885   :  { %v1869_v48 = vadd.f32 %v2025_v46, %v2882_v11 }
 0x887   :  { %1871 = vst.msk [vmem:[#allocation2 + $0x8] sm:$0xff] %vm47_vm0, %v1869_v48 }
 0x888   :  { %2346 = shalt.err (!%p2343_p4)
}
 0x889   :  { %s2367_s1 = smov 128  }
 0x88a   :  { %1883 = dma.vmem_to_hbm [thread:$0]  %s1878_s5, 256, %s3009_s10, [#allocation3], %s2367_s1, %s2367_s1, %s2361_s23  }
 0x88b   :  { %2355 = dma.done.wait [#allocation3], 256  }
 0x88c   :  { %2356 = vsyncadd [#allocation3], 4294967040 }
 0x88d   :  { %1887 = vsyncpa [#allocation3], 1 }

</bundles_post_ra>
